<compile_context>
chip_gen: v7x
topology: tpu7x:2x2x1
jax: 0.10.0
libtpu: 0.0.40
codegen_flags: <defaults>
</compile_context>

<pallas_src>
import jax
import jax.numpy as jnp
from jax import lax
from jax.experimental import pallas as pl
from jax.experimental.pallas import tpu as pltpu


def _round_up(x, m):
    return ((x + m - 1) // m) * m


# ----------------------------------------------------------------------------
# Kernel: prologue (batched GI) -> serial GRU recurrence -> epilogue (proj).
# ----------------------------------------------------------------------------
def _gru_decoder_fused_kernel(x_ref, h0_ref, wih_ref, whh_ref, b_ref,
                              wout_ref, bout_ref, ys_ref, hout_ref,
                              gi_sc, hs_sc):
    """Refs (all VMEM, single kernel invocation):

      x_ref    : (T, Hp)      all timestep inputs (lane-padded)
      h0_ref   : (1, Hp)      initial hidden state
      wih_ref  : (Hp, 3*Hp)   W_ih^T, per-gate 128-lane padded  (gates r|z|n)
      whh_ref  : (Hp, 3*Hp)   W_hh^T, per-gate 128-lane padded
      b_ref    : (2, 3*Hp)    row 0 = b_ih, row 1 = b_hh (gate padded)
      wout_ref : (Hp, Op)     W_out^T (padded)
      bout_ref : (1, Op)      b_out   (padded)
      ys_ref   : (T, Op)      logits for all timesteps (lane-dense store)
      hout_ref : (1, Hp)      final hidden state (written once)
      gi_sc    : (T, 3*Hp) f32  VMEM scratch: input-gate pre-activations
      hs_sc    : (T, Hp)   f32  VMEM scratch: per-step GRU outputs

    Padded-lane invariant: padded lanes of x/h0/biases/weight rows+cols are
    exactly 0, so padded lanes of h stay exactly 0 through the recurrence
    (n=0, h_prev=0 there).  Keep this invariant if changing the packing.
    """
    T = x_ref.shape[0]
    Gp = h0_ref.shape[-1]                   # per-gate padded lane width (mult of 128)

    # ---- Prologue: batched input-gate matmul (M = T fills MXU rows). ----
    gi_sc[...] = (jnp.dot(x_ref[...].astype(jnp.float32), wih_ref[...],
                          preferred_element_type=jnp.float32)
                  + b_ref[0:1, :])

    b_hh = b_ref[1:2, :]

    # ---- Serial recurrence: only h-dependent work on the critical path. ----
    def step(t, h):
        gi = gi_sc[pl.ds(t, 1), :]                                    # (1, 3Gp)
        gh = jnp.dot(h, whh_ref[...],
                     preferred_element_type=jnp.float32) + b_hh       # (1, 3Gp)
        # r and z in one add + one sigmoid over the first 2*Gp lanes.
        rz = jax.nn.sigmoid(gi[:, 0:2 * Gp] + gh[:, 0:2 * Gp])
        r = rz[:, 0:Gp]
        z = rz[:, Gp:2 * Gp]
        n = jnp.tanh(gi[:, 2 * Gp:3 * Gp] + r * gh[:, 2 * Gp:3 * Gp])
        h_new = (1.0 - z) * n + z * h
        hs_sc[pl.ds(t, 1), :] = h_new
        return h_new

    h_final = lax.fori_loop(0, T, step, h0_ref[...].astype(jnp.float32),
                            unroll=(T <= 16))
    hout_ref[...] = h_final.astype(hout_ref.dtype)

    # ---- Epilogue: batched output projection (M = T, lane-dense store). ----
    ys_ref[...] = (jnp.dot(hs_sc[...], wout_ref[...],
                           preferred_element_type=jnp.float32)
                   + bout_ref[...]).astype(ys_ref.dtype)


# ----------------------------------------------------------------------------
# Parameter packing (done ONCE, at init): transpose + per-gate lane padding.
# ----------------------------------------------------------------------------
def pack_params(H, O, w_ih, w_hh, b_ih, b_hh, w_out, b_out, dtype=jnp.float32):
    Hp = _round_up(H, 128)
    Op = _round_up(O, 128)

    def pad_gate_w(w):                       # (3H, H) -> (Hp, 3*Hp)
        wt = w.T                             # (H, 3H), columns = [r | z | n]
        out = jnp.zeros((Hp, 3 * Hp), jnp.float32)
        for g in range(3):
            out = out.at[:H, g * Hp:g * Hp + H].set(wt[:, g * H:(g + 1) * H])
        return out.astype(dtype)

    def pad_gate_b(b):                       # (3H,) -> (3*Hp,)
        out = jnp.zeros((3 * Hp,), jnp.float32)
        for g in range(3):
            out = out.at[g * Hp:g * Hp + H].set(b[g * H:(g + 1) * H])
        return out.astype(jnp.float32)       # biases stay fp32

    return {
        "hidden_size": H, "output_size": O, "Hp": Hp, "Op": Op,
        "wih": pad_gate_w(w_ih),
        "whh": pad_gate_w(w_hh),
        "b": jnp.stack([pad_gate_b(b_ih), pad_gate_b(b_hh)], axis=0),   # (2, 3Hp)
        "wout": jnp.zeros((Hp, Op), jnp.float32).at[:H, :O].set(w_out.T).astype(dtype),
        "bout": jnp.zeros((1, Op), jnp.float32).at[0, :O].set(b_out),
        "raw": (w_ih, w_hh, b_ih, b_hh, w_out, b_out),
    }


def init_params(key, hidden_size, output_size, dtype=jnp.float32):
    """PyTorch-style init: U(-1/sqrt(H), 1/sqrt(H)), PyTorch shapes, then packed."""
    H, O = hidden_size, output_size
    k = 1.0 / jnp.sqrt(jnp.float32(H))
    keys = jax.random.split(key, 6)
    u = lambda kk, shape: jax.random.uniform(kk, shape, jnp.float32, -k, k)
    return pack_params(
        H, O,
        u(keys[0], (3 * H, H)),   # GRU weight_ih_l0
        u(keys[1], (3 * H, H)),   # GRU weight_hh_l0
        u(keys[2], (3 * H,)),     # GRU bias_ih_l0
        u(keys[3], (3 * H,)),     # GRU bias_hh_l0
        u(keys[4], (O, H)),       # Linear weight
        u(keys[5], (O,)),         # Linear bias
        dtype=dtype,
    )


def init_hidden(hidden_size):
    return jnp.zeros((1, 1, hidden_size), jnp.float32)


# ----------------------------------------------------------------------------
# Wrappers
# ----------------------------------------------------------------------------
def decoder_rnn_forward_fused(xs, hidden, params):
    """Run T decode steps in one pallas_call / one kernel invocation.

    xs     : (T, hidden_size) (or anything reshapeable to it)
    hidden : (1, 1, hidden_size)
    returns (logits (T, output_size), hidden (1, 1, hidden_size))
    """
    H, O = params["hidden_size"], params["output_size"]
    Hp, Op = params["Hp"], params["Op"]

    xs = jnp.reshape(xs, (-1, H)).astype(jnp.float32)
    T = xs.shape[0]

    xs_p = jnp.zeros((T, Hp), jnp.float32).at[:, :H].set(xs)
    h0_p = jnp.zeros((1, Hp), jnp.float32).at[0, :H].set(
        jnp.reshape(hidden, (H,)).astype(jnp.float32))

    whole = lambda i: (0, 0)   # full-array operands, DMA'd once

    ys_p, h_p = pl.pallas_call(
        _gru_decoder_fused_kernel,
        grid=(1,),
        in_specs=[
            pl.BlockSpec((T, Hp), whole),                    # all inputs
            pl.BlockSpec((1, Hp), whole),                    # h0
            pl.BlockSpec((Hp, 3 * Hp), whole),               # W_ih^T
            pl.BlockSpec((Hp, 3 * Hp), whole),               # W_hh^T
            pl.BlockSpec((2, 3 * Hp), whole),                # [b_ih; b_hh]
            pl.BlockSpec((Hp, Op), whole),                   # W_out^T
            pl.BlockSpec((1, Op), whole),                    # b_out
        ],
        out_specs=(
            pl.BlockSpec((T, Op), whole),                    # all logits
            pl.BlockSpec((1, Hp), whole),                    # final hidden
        ),
        out_shape=(
            jax.ShapeDtypeStruct((T, Op), jnp.float32),
            jax.ShapeDtypeStruct((1, Hp), jnp.float32),
        ),
        scratch_shapes=[
            pltpu.VMEM((T, 3 * Hp), jnp.float32),            # GI prologue buffer
            pltpu.VMEM((T, Hp), jnp.float32),                # per-step h buffer
        ],
        compiler_params=pltpu.CompilerParams(
            dimension_semantics=("arbitrary",)),
    )(xs_p, h0_p, params["wih"], params["whh"], params["b"],
      params["wout"], params["bout"])

    logits = ys_p[:, :O]                    # lane-dense store, wrapper-side slice
    new_hidden = h_p[:, :H].reshape(1, 1, H)
    return logits, new_hidden


def decoder_rnn_forward(inp, hidden, params):
    """Exactly mirrors DecoderRNN.forward(input, hidden) — one step."""
    logits, new_hidden = decoder_rnn_forward_fused(
        jnp.reshape(inp, (1, -1)), hidden, params)
    return logits.reshape(1, params["output_size"]), new_hidden


# ----------------------------------------------------------------------------
# Pure-JAX reference (for correctness checking only)
# ----------------------------------------------------------------------------
def _reference_forward(xs, hidden, raw, H, O):
    w_ih, w_hh, b_ih, b_hh, w_out, b_out = raw
    hp = lax.Precision.HIGHEST
    h = jnp.reshape(hidden, (1, H))
    ys = []
    for t in range(xs.shape[0]):
        x = xs[t].reshape(1, H)
        gi = jnp.dot(x, w_ih.T, precision=hp) + b_ih
        gh = jnp.dot(h, w_hh.T, precision=hp) + b_hh
        r = jax.nn.sigmoid(gi[:, :H] + gh[:, :H])
        z = jax.nn.sigmoid(gi[:, H:2 * H] + gh[:, H:2 * H])
        n = jnp.tanh(gi[:, 2 * H:] + r * gh[:, 2 * H:])
        h = (1.0 - z) * n + z * h
        ys.append(jnp.dot(h, w_out.T, precision=hp) + b_out)
    return jnp.concatenate(ys, axis=0), h.reshape(1, 1, H)


if __name__ == "__main__":
    HIDDEN, OUTPUT, STEPS = 32, 16, 8

    key = jax.random.PRNGKey(0)
    pkey, xkey = jax.random.split(key)
    params = init_params(pkey, HIDDEN, OUTPUT)

    xs = jax.random.normal(xkey, (STEPS, HIDDEN), jnp.float32)
    hidden = init_hidden(HIDDEN)

    # Fused multi-step decode (one pallas_call, one kernel invocation).
    logits, new_hidden = decoder_rnn_forward_fused(xs, hidden, params)
    jax.block_until_ready((logits, new_hidden))
    assert logits.shape == (STEPS, OUTPUT)
    assert new_hidden.shape == (1, 1, HIDDEN)

    # Single-step API matching the PyTorch forward signature.
    y1, h1 = decoder_rnn_forward(xs[0], hidden, params)
    jax.block_until_ready((y1, h1))
    assert y1.shape == (1, OUTPUT)
    assert h1.shape == (1, 1, HIDDEN)

    # Numerical check against a pure-JAX reference.
    ref_y, ref_h = _reference_forward(xs, hidden, params["raw"], HIDDEN, OUTPUT)
    assert jnp.allclose(logits, ref_y, atol=5e-3, rtol=5e-3)
    assert jnp.allclose(new_hidden, ref_h, atol=5e-3, rtol=5e-3)
    ref_y1, _ = _reference_forward(xs[:1], hidden, params["raw"], HIDDEN, OUTPUT)
    assert jnp.allclose(y1, ref_y1, atol=5e-3, rtol=5e-3)

    print("KERNEL_OK")
</pallas_src>

<mosaic_0001>
module attributes {stable_mosaic.version = 11 : i64} {
  func.func @_gru_decoder_fused_kernel(%arg0: i32, %arg1: memref<8x128xf32, #tpu.memory_space<vmem>>, %arg2: memref<1x128xf32, #tpu.memory_space<vmem>>, %arg3: memref<128x384xf32, #tpu.memory_space<vmem>>, %arg4: memref<128x384xf32, #tpu.memory_space<vmem>>, %arg5: memref<2x384xf32, #tpu.memory_space<vmem>>, %arg6: memref<128x128xf32, #tpu.memory_space<vmem>>, %arg7: memref<1x128xf32, #tpu.memory_space<vmem>>, %arg8: memref<8x128xf32, #tpu.memory_space<vmem>>, %arg9: memref<1x128xf32, #tpu.memory_space<vmem>>, %arg10: memref<8x384xf32, #tpu.memory_space<vmem>>, %arg11: memref<8x128xf32, #tpu.memory_space<vmem>>) attributes {dimension_semantics = [#tpu.dimension_semantics<arbitrary>], iteration_bounds = array<i64: 1>, scalar_prefetch = 0 : i64, scratch_operands = 2 : i64, tpu.core_type = #tpu.core_type<tc>, window_params = [{pipeline_mode = #tpu.pipeline_mode<synchronous>, transform_indices = @transform_0, window_bounds = array<i64: 8, 128>}, {pipeline_mode = #tpu.pipeline_mode<synchronous>, transform_indices = @transform_1, window_bounds = array<i64: 1, 128>}, {pipeline_mode = #tpu.pipeline_mode<synchronous>, transform_indices = @transform_2, window_bounds = array<i64: 128, 384>}, {pipeline_mode = #tpu.pipeline_mode<synchronous>, transform_indices = @transform_3, window_bounds = array<i64: 128, 384>}, {pipeline_mode = #tpu.pipeline_mode<synchronous>, transform_indices = @transform_4, window_bounds = array<i64: 2, 384>}, {pipeline_mode = #tpu.pipeline_mode<synchronous>, transform_indices = @transform_5, window_bounds = array<i64: 128, 128>}, {pipeline_mode = #tpu.pipeline_mode<synchronous>, transform_indices = @transform_6, window_bounds = array<i64: 1, 128>}, {pipeline_mode = #tpu.pipeline_mode<synchronous>, transform_indices = @transform_7, window_bounds = array<i64: 8, 128>}, {pipeline_mode = #tpu.pipeline_mode<synchronous>, transform_indices = @transform_8, window_bounds = array<i64: 1, 128>}]} {
    %c0 = arith.constant 0 : index
    %c0_0 = arith.constant 0 : index
    %0 = vector.load %arg1[%c0, %c0_0] : memref<8x128xf32, #tpu.memory_space<vmem>>, vector<8x128xf32>
    %c0_1 = arith.constant 0 : index
    %c0_2 = arith.constant 0 : index
    %1 = vector.load %arg3[%c0_1, %c0_2] : memref<128x384xf32, #tpu.memory_space<vmem>>, vector<128x384xf32>
    %cst = arith.constant dense<0.000000e+00> : vector<8x384xf32>
    %2 = tpu.matmul %0, %1, %cst {dimension_numbers = #tpu.dot_dimension_numbers<[1], [0], [0], [1], [0, 0, 1, 1], [], []>} : vector<8x128xf32>, vector<128x384xf32>, vector<8x384xf32> -> vector<8x384xf32>
    %c0_3 = arith.constant 0 : index
    %c0_4 = arith.constant 0 : index
    %3 = vector.load %arg5[%c0_3, %c0_4] : memref<2x384xf32, #tpu.memory_space<vmem>>, vector<1x384xf32>
    %4 = vector.broadcast %3 : vector<1x384xf32> to vector<8x384xf32>
    %5 = arith.addf %2, %4 : vector<8x384xf32>
    %c0_5 = arith.constant 0 : index
    %c0_6 = arith.constant 0 : index
    %6 = vector.load %arg10[%c0_5, %c0_6] : memref<8x384xf32, #tpu.memory_space<vmem>>, vector<8x384xf32>
    tpu.vector_store %arg10[%c0_5, %c0_6], %5 {strides = array<i32>} : memref<8x384xf32, #tpu.memory_space<vmem>>, vector<8x384xf32>,
    %c1 = arith.constant 1 : index
    %c0_7 = arith.constant 0 : index
    %7 = vector.load %arg5[%c1, %c0_7] : memref<2x384xf32, #tpu.memory_space<vmem>>, vector<1x384xf32>
    %c0_8 = arith.constant 0 : index
    %c0_9 = arith.constant 0 : index
    %8 = vector.load %arg2[%c0_8, %c0_9] : memref<1x128xf32, #tpu.memory_space<vmem>>, vector<1x128xf32>
    %c0_i32 = arith.constant 0 : i32
    %9 = arith.index_cast %c0_i32 : i32 to index
    %c0_10 = arith.constant 0 : index
    %10 = vector.load %arg10[%9, %c0_10] : memref<8x384xf32, #tpu.memory_space<vmem>>, vector<1x384xf32>
    %c0_11 = arith.constant 0 : index
    %c0_12 = arith.constant 0 : index
    %11 = vector.load %arg4[%c0_11, %c0_12] : memref<128x384xf32, #tpu.memory_space<vmem>>, vector<128x384xf32>
    %cst_13 = arith.constant dense<0.000000e+00> : vector<1x384xf32>
    %12 = tpu.matmul %8, %11, %cst_13 {dimension_numbers = #tpu.dot_dimension_numbers<[1], [0], [0], [1], [0, 0, 1, 1], [], []>} : vector<1x128xf32>, vector<128x384xf32>, vector<1x384xf32> -> vector<1x384xf32>
    %13 = arith.addf %12, %7 : vector<1x384xf32>
    %14 = vector.extract_strided_slice %10 {offsets = [0, 0], sizes = [1, 256], strides = [1, 1]} : vector<1x384xf32> to vector<1x256xf32>
    %15 = vector.extract_strided_slice %13 {offsets = [0, 0], sizes = [1, 256], strides = [1, 1]} : vector<1x384xf32> to vector<1x256xf32>
    %16 = arith.addf %14, %15 : vector<1x256xf32>
    %17 = arith.negf %16 : vector<1x256xf32>
    %18 = math.exp %17 : vector<1x256xf32>
    %cst_14 = arith.constant 1.000000e+00 : f32
    %19 = vector.broadcast %cst_14 : f32 to vector<1x256xf32>
    %20 = arith.addf %19, %18 : vector<1x256xf32>
    %21 = arith.divf %19, %20 : vector<1x256xf32>
    %22 = vector.extract_strided_slice %21 {offsets = [0, 0], sizes = [1, 128], strides = [1, 1]} : vector<1x256xf32> to vector<1x128xf32>
    %23 = vector.extract_strided_slice %21 {offsets = [0, 128], sizes = [1, 128], strides = [1, 1]} : vector<1x256xf32> to vector<1x128xf32>
    %24 = vector.extract_strided_slice %10 {offsets = [0, 256], sizes = [1, 128], strides = [1, 1]} : vector<1x384xf32> to vector<1x128xf32>
    %25 = vector.extract_strided_slice %13 {offsets = [0, 256], sizes = [1, 128], strides = [1, 1]} : vector<1x384xf32> to vector<1x128xf32>
    %26 = arith.mulf %22, %25 : vector<1x128xf32>
    %27 = arith.addf %24, %26 : vector<1x128xf32>
    %28 = math.tanh %27 : vector<1x128xf32>
    %cst_15 = arith.constant 1.000000e+00 : f32
    %29 = vector.broadcast %cst_15 : f32 to vector<1x128xf32>
    %30 = arith.subf %29, %23 : vector<1x128xf32>
    %31 = arith.mulf %30, %28 : vector<1x128xf32>
    %32 = arith.mulf %23, %8 : vector<1x128xf32>
    %33 = arith.addf %31, %32 : vector<1x128xf32>
    %34 = arith.index_cast %c0_i32 : i32 to index
    %c0_16 = arith.constant 0 : index
    %35 = vector.load %arg11[%34, %c0_16] : memref<8x128xf32, #tpu.memory_space<vmem>>, vector<1x128xf32>
    tpu.vector_store %arg11[%34, %c0_16], %33 {strides = array<i32>} : memref<8x128xf32, #tpu.memory_space<vmem>>, vector<1x128xf32>,
    %c1_i32 = arith.constant 1 : i32
    %36 = arith.index_cast %c1_i32 : i32 to index
    %c0_17 = arith.constant 0 : index
    %37 = vector.load %arg10[%36, %c0_17] : memref<8x384xf32, #tpu.memory_space<vmem>>, vector<1x384xf32>
    %c0_18 = arith.constant 0 : index
    %c0_19 = arith.constant 0 : index
    %38 = vector.load %arg4[%c0_18, %c0_19] : memref<128x384xf32, #tpu.memory_space<vmem>>, vector<128x384xf32>
    %cst_20 = arith.constant dense<0.000000e+00> : vector<1x384xf32>
    %39 = tpu.matmul %33, %38, %cst_20 {dimension_numbers = #tpu.dot_dimension_numbers<[1], [0], [0], [1], [0, 0, 1, 1], [], []>} : vector<1x128xf32>, vector<128x384xf32>, vector<1x384xf32> -> vector<1x384xf32>
    %40 = arith.addf %39, %7 : vector<1x384xf32>
    %41 = vector.extract_strided_slice %37 {offsets = [0, 0], sizes = [1, 256], strides = [1, 1]} : vector<1x384xf32> to vector<1x256xf32>
    %42 = vector.extract_strided_slice %40 {offsets = [0, 0], sizes = [1, 256], strides = [1, 1]} : vector<1x384xf32> to vector<1x256xf32>
    %43 = arith.addf %41, %42 : vector<1x256xf32>
    %44 = arith.negf %43 : vector<1x256xf32>
    %45 = math.exp %44 : vector<1x256xf32>
    %cst_21 = arith.constant 1.000000e+00 : f32
    %46 = vector.broadcast %cst_21 : f32 to vector<1x256xf32>
    %47 = arith.addf %46, %45 : vector<1x256xf32>
    %48 = arith.divf %46, %47 : vector<1x256xf32>
    %49 = vector.extract_strided_slice %48 {offsets = [0, 0], sizes = [1, 128], strides = [1, 1]} : vector<1x256xf32> to vector<1x128xf32>
    %50 = vector.extract_strided_slice %48 {offsets = [0, 128], sizes = [1, 128], strides = [1, 1]} : vector<1x256xf32> to vector<1x128xf32>
    %51 = vector.extract_strided_slice %37 {offsets = [0, 256], sizes = [1, 128], strides = [1, 1]} : vector<1x384xf32> to vector<1x128xf32>
    %52 = vector.extract_strided_slice %40 {offsets = [0, 256], sizes = [1, 128], strides = [1, 1]} : vector<1x384xf32> to vector<1x128xf32>
    %53 = arith.mulf %49, %52 : vector<1x128xf32>
    %54 = arith.addf %51, %53 : vector<1x128xf32>
    %55 = math.tanh %54 : vector<1x128xf32>
    %cst_22 = arith.constant 1.000000e+00 : f32
    %56 = vector.broadcast %cst_22 : f32 to vector<1x128xf32>
    %57 = arith.subf %56, %50 : vector<1x128xf32>
    %58 = arith.mulf %57, %55 : vector<1x128xf32>
    %59 = arith.mulf %50, %33 : vector<1x128xf32>
    %60 = arith.addf %58, %59 : vector<1x128xf32>
    %61 = arith.index_cast %c1_i32 : i32 to index
    %c0_23 = arith.constant 0 : index
    %62 = vector.load %arg11[%61, %c0_23] : memref<8x128xf32, #tpu.memory_space<vmem>>, vector<1x128xf32>
    tpu.vector_store %arg11[%61, %c0_23], %60 {strides = array<i32>} : memref<8x128xf32, #tpu.memory_space<vmem>>, vector<1x128xf32>,
    %c2_i32 = arith.constant 2 : i32
    %63 = arith.index_cast %c2_i32 : i32 to index
    %c0_24 = arith.constant 0 : index
    %64 = vector.load %arg10[%63, %c0_24] : memref<8x384xf32, #tpu.memory_space<vmem>>, vector<1x384xf32>
    %c0_25 = arith.constant 0 : index
    %c0_26 = arith.constant 0 : index
    %65 = vector.load %arg4[%c0_25, %c0_26] : memref<128x384xf32, #tpu.memory_space<vmem>>, vector<128x384xf32>
    %cst_27 = arith.constant dense<0.000000e+00> : vector<1x384xf32>
    %66 = tpu.matmul %60, %65, %cst_27 {dimension_numbers = #tpu.dot_dimension_numbers<[1], [0], [0], [1], [0, 0, 1, 1], [], []>} : vector<1x128xf32>, vector<128x384xf32>, vector<1x384xf32> -> vector<1x384xf32>
    %67 = arith.addf %66, %7 : vector<1x384xf32>
    %68 = vector.extract_strided_slice %64 {offsets = [0, 0], sizes = [1, 256], strides = [1, 1]} : vector<1x384xf32> to vector<1x256xf32>
    %69 = vector.extract_strided_slice %67 {offsets = [0, 0], sizes = [1, 256], strides = [1, 1]} : vector<1x384xf32> to vector<1x256xf32>
    %70 = arith.addf %68, %69 : vector<1x256xf32>
    %71 = arith.negf %70 : vector<1x256xf32>
    %72 = math.exp %71 : vector<1x256xf32>
    %cst_28 = arith.constant 1.000000e+00 : f32
    %73 = vector.broadcast %cst_28 : f32 to vector<1x256xf32>
    %74 = arith.addf %73, %72 : vector<1x256xf32>
    %75 = arith.divf %73, %74 : vector<1x256xf32>
    %76 = vector.extract_strided_slice %75 {offsets = [0, 0], sizes = [1, 128], strides = [1, 1]} : vector<1x256xf32> to vector<1x128xf32>
    %77 = vector.extract_strided_slice %75 {offsets = [0, 128], sizes = [1, 128], strides = [1, 1]} : vector<1x256xf32> to vector<1x128xf32>
    %78 = vector.extract_strided_slice %64 {offsets = [0, 256], sizes = [1, 128], strides = [1, 1]} : vector<1x384xf32> to vector<1x128xf32>
    %79 = vector.extract_strided_slice %67 {offsets = [0, 256], sizes = [1, 128], strides = [1, 1]} : vector<1x384xf32> to vector<1x128xf32>
    %80 = arith.mulf %76, %79 : vector<1x128xf32>
    %81 = arith.addf %78, %80 : vector<1x128xf32>
    %82 = math.tanh %81 : vector<1x128xf32>
    %cst_29 = arith.constant 1.000000e+00 : f32
    %83 = vector.broadcast %cst_29 : f32 to vector<1x128xf32>
    %84 = arith.subf %83, %77 : vector<1x128xf32>
    %85 = arith.mulf %84, %82 : vector<1x128xf32>
    %86 = arith.mulf %77, %60 : vector<1x128xf32>
    %87 = arith.addf %85, %86 : vector<1x128xf32>
    %88 = arith.index_cast %c2_i32 : i32 to index
    %c0_30 = arith.constant 0 : index
    %89 = vector.load %arg11[%88, %c0_30] : memref<8x128xf32, #tpu.memory_space<vmem>>, vector<1x128xf32>
    tpu.vector_store %arg11[%88, %c0_30], %87 {strides = array<i32>} : memref<8x128xf32, #tpu.memory_space<vmem>>, vector<1x128xf32>,
    %c3_i32 = arith.constant 3 : i32
    %90 = arith.index_cast %c3_i32 : i32 to index
    %c0_31 = arith.constant 0 : index
    %91 = vector.load %arg10[%90, %c0_31] : memref<8x384xf32, #tpu.memory_space<vmem>>, vector<1x384xf32>
    %c0_32 = arith.constant 0 : index
    %c0_33 = arith.constant 0 : index
    %92 = vector.load %arg4[%c0_32, %c0_33] : memref<128x384xf32, #tpu.memory_space<vmem>>, vector<128x384xf32>
    %cst_34 = arith.constant dense<0.000000e+00> : vector<1x384xf32>
    %93 = tpu.matmul %87, %92, %cst_34 {dimension_numbers = #tpu.dot_dimension_numbers<[1], [0], [0], [1], [0, 0, 1, 1], [], []>} : vector<1x128xf32>, vector<128x384xf32>, vector<1x384xf32> -> vector<1x384xf32>
    %94 = arith.addf %93, %7 : vector<1x384xf32>
    %95 = vector.extract_strided_slice %91 {offsets = [0, 0], sizes = [1, 256], strides = [1, 1]} : vector<1x384xf32> to vector<1x256xf32>
    %96 = vector.extract_strided_slice %94 {offsets = [0, 0], sizes = [1, 256], strides = [1, 1]} : vector<1x384xf32> to vector<1x256xf32>
    %97 = arith.addf %95, %96 : vector<1x256xf32>
    %98 = arith.negf %97 : vector<1x256xf32>
    %99 = math.exp %98 : vector<1x256xf32>
    %cst_35 = arith.constant 1.000000e+00 : f32
    %100 = vector.broadcast %cst_35 : f32 to vector<1x256xf32>
    %101 = arith.addf %100, %99 : vector<1x256xf32>
    %102 = arith.divf %100, %101 : vector<1x256xf32>
    %103 = vector.extract_strided_slice %102 {offsets = [0, 0], sizes = [1, 128], strides = [1, 1]} : vector<1x256xf32> to vector<1x128xf32>
    %104 = vector.extract_strided_slice %102 {offsets = [0, 128], sizes = [1, 128], strides = [1, 1]} : vector<1x256xf32> to vector<1x128xf32>
    %105 = vector.extract_strided_slice %91 {offsets = [0, 256], sizes = [1, 128], strides = [1, 1]} : vector<1x384xf32> to vector<1x128xf32>
    %106 = vector.extract_strided_slice %94 {offsets = [0, 256], sizes = [1, 128], strides = [1, 1]} : vector<1x384xf32> to vector<1x128xf32>
    %107 = arith.mulf %103, %106 : vector<1x128xf32>
    %108 = arith.addf %105, %107 : vector<1x128xf32>
    %109 = math.tanh %108 : vector<1x128xf32>
    %cst_36 = arith.constant 1.000000e+00 : f32
    %110 = vector.broadcast %cst_36 : f32 to vector<1x128xf32>
    %111 = arith.subf %110, %104 : vector<1x128xf32>
    %112 = arith.mulf %111, %109 : vector<1x128xf32>
    %113 = arith.mulf %104, %87 : vector<1x128xf32>
    %114 = arith.addf %112, %113 : vector<1x128xf32>
    %115 = arith.index_cast %c3_i32 : i32 to index
    %c0_37 = arith.constant 0 : index
    %116 = vector.load %arg11[%115, %c0_37] : memref<8x128xf32, #tpu.memory_space<vmem>>, vector<1x128xf32>
    tpu.vector_store %arg11[%115, %c0_37], %114 {strides = array<i32>} : memref<8x128xf32, #tpu.memory_space<vmem>>, vector<1x128xf32>,
    %c4_i32 = arith.constant 4 : i32
    %117 = arith.index_cast %c4_i32 : i32 to index
    %c0_38 = arith.constant 0 : index
    %118 = vector.load %arg10[%117, %c0_38] : memref<8x384xf32, #tpu.memory_space<vmem>>, vector<1x384xf32>
    %c0_39 = arith.constant 0 : index
    %c0_40 = arith.constant 0 : index
    %119 = vector.load %arg4[%c0_39, %c0_40] : memref<128x384xf32, #tpu.memory_space<vmem>>, vector<128x384xf32>
    %cst_41 = arith.constant dense<0.000000e+00> : vector<1x384xf32>
    %120 = tpu.matmul %114, %119, %cst_41 {dimension_numbers = #tpu.dot_dimension_numbers<[1], [0], [0], [1], [0, 0, 1, 1], [], []>} : vector<1x128xf32>, vector<128x384xf32>, vector<1x384xf32> -> vector<1x384xf32>
    %121 = arith.addf %120, %7 : vector<1x384xf32>
    %122 = vector.extract_strided_slice %118 {offsets = [0, 0], sizes = [1, 256], strides = [1, 1]} : vector<1x384xf32> to vector<1x256xf32>
    %123 = vector.extract_strided_slice %121 {offsets = [0, 0], sizes = [1, 256], strides = [1, 1]} : vector<1x384xf32> to vector<1x256xf32>
    %124 = arith.addf %122, %123 : vector<1x256xf32>
    %125 = arith.negf %124 : vector<1x256xf32>
    %126 = math.exp %125 : vector<1x256xf32>
    %cst_42 = arith.constant 1.000000e+00 : f32
    %127 = vector.broadcast %cst_42 : f32 to vector<1x256xf32>
    %128 = arith.addf %127, %126 : vector<1x256xf32>
    %129 = arith.divf %127, %128 : vector<1x256xf32>
    %130 = vector.extract_strided_slice %129 {offsets = [0, 0], sizes = [1, 128], strides = [1, 1]} : vector<1x256xf32> to vector<1x128xf32>
    %131 = vector.extract_strided_slice %129 {offsets = [0, 128], sizes = [1, 128], strides = [1, 1]} : vector<1x256xf32> to vector<1x128xf32>
    %132 = vector.extract_strided_slice %118 {offsets = [0, 256], sizes = [1, 128], strides = [1, 1]} : vector<1x384xf32> to vector<1x128xf32>
    %133 = vector.extract_strided_slice %121 {offsets = [0, 256], sizes = [1, 128], strides = [1, 1]} : vector<1x384xf32> to vector<1x128xf32>
    %134 = arith.mulf %130, %133 : vector<1x128xf32>
    %135 = arith.addf %132, %134 : vector<1x128xf32>
    %136 = math.tanh %135 : vector<1x128xf32>
    %cst_43 = arith.constant 1.000000e+00 : f32
    %137 = vector.broadcast %cst_43 : f32 to vector<1x128xf32>
    %138 = arith.subf %137, %131 : vector<1x128xf32>
    %139 = arith.mulf %138, %136 : vector<1x128xf32>
    %140 = arith.mulf %131, %114 : vector<1x128xf32>
    %141 = arith.addf %139, %140 : vector<1x128xf32>
    %142 = arith.index_cast %c4_i32 : i32 to index
    %c0_44 = arith.constant 0 : index
    %143 = vector.load %arg11[%142, %c0_44] : memref<8x128xf32, #tpu.memory_space<vmem>>, vector<1x128xf32>
    tpu.vector_store %arg11[%142, %c0_44], %141 {strides = array<i32>} : memref<8x128xf32, #tpu.memory_space<vmem>>, vector<1x128xf32>,
    %c5_i32 = arith.constant 5 : i32
    %144 = arith.index_cast %c5_i32 : i32 to index
    %c0_45 = arith.constant 0 : index
    %145 = vector.load %arg10[%144, %c0_45] : memref<8x384xf32, #tpu.memory_space<vmem>>, vector<1x384xf32>
    %c0_46 = arith.constant 0 : index
    %c0_47 = arith.constant 0 : index
    %146 = vector.load %arg4[%c0_46, %c0_47] : memref<128x384xf32, #tpu.memory_space<vmem>>, vector<128x384xf32>
    %cst_48 = arith.constant dense<0.000000e+00> : vector<1x384xf32>
    %147 = tpu.matmul %141, %146, %cst_48 {dimension_numbers = #tpu.dot_dimension_numbers<[1], [0], [0], [1], [0, 0, 1, 1], [], []>} : vector<1x128xf32>, vector<128x384xf32>, vector<1x384xf32> -> vector<1x384xf32>
    %148 = arith.addf %147, %7 : vector<1x384xf32>
    %149 = vector.extract_strided_slice %145 {offsets = [0, 0], sizes = [1, 256], strides = [1, 1]} : vector<1x384xf32> to vector<1x256xf32>
    %150 = vector.extract_strided_slice %148 {offsets = [0, 0], sizes = [1, 256], strides = [1, 1]} : vector<1x384xf32> to vector<1x256xf32>
    %151 = arith.addf %149, %150 : vector<1x256xf32>
    %152 = arith.negf %151 : vector<1x256xf32>
    %153 = math.exp %152 : vector<1x256xf32>
    %cst_49 = arith.constant 1.000000e+00 : f32
    %154 = vector.broadcast %cst_49 : f32 to vector<1x256xf32>
    %155 = arith.addf %154, %153 : vector<1x256xf32>
    %156 = arith.divf %154, %155 : vector<1x256xf32>
    %157 = vector.extract_strided_slice %156 {offsets = [0, 0], sizes = [1, 128], strides = [1, 1]} : vector<1x256xf32> to vector<1x128xf32>
    %158 = vector.extract_strided_slice %156 {offsets = [0, 128], sizes = [1, 128], strides = [1, 1]} : vector<1x256xf32> to vector<1x128xf32>
    %159 = vector.extract_strided_slice %145 {offsets = [0, 256], sizes = [1, 128], strides = [1, 1]} : vector<1x384xf32> to vector<1x128xf32>
    %160 = vector.extract_strided_slice %148 {offsets = [0, 256], sizes = [1, 128], strides = [1, 1]} : vector<1x384xf32> to vector<1x128xf32>
    %161 = arith.mulf %157, %160 : vector<1x128xf32>
    %162 = arith.addf %159, %161 : vector<1x128xf32>
    %163 = math.tanh %162 : vector<1x128xf32>
    %cst_50 = arith.constant 1.000000e+00 : f32
    %164 = vector.broadcast %cst_50 : f32 to vector<1x128xf32>
    %165 = arith.subf %164, %158 : vector<1x128xf32>
    %166 = arith.mulf %165, %163 : vector<1x128xf32>
    %167 = arith.mulf %158, %141 : vector<1x128xf32>
    %168 = arith.addf %166, %167 : vector<1x128xf32>
    %169 = arith.index_cast %c5_i32 : i32 to index
    %c0_51 = arith.constant 0 : index
    %170 = vector.load %arg11[%169, %c0_51] : memref<8x128xf32, #tpu.memory_space<vmem>>, vector<1x128xf32>
    tpu.vector_store %arg11[%169, %c0_51], %168 {strides = array<i32>} : memref<8x128xf32, #tpu.memory_space<vmem>>, vector<1x128xf32>,
    %c6_i32 = arith.constant 6 : i32
    %171 = arith.index_cast %c6_i32 : i32 to index
    %c0_52 = arith.constant 0 : index
    %172 = vector.load %arg10[%171, %c0_52] : memref<8x384xf32, #tpu.memory_space<vmem>>, vector<1x384xf32>
    %c0_53 = arith.constant 0 : index
    %c0_54 = arith.constant 0 : index
    %173 = vector.load %arg4[%c0_53, %c0_54] : memref<128x384xf32, #tpu.memory_space<vmem>>, vector<128x384xf32>
    %cst_55 = arith.constant dense<0.000000e+00> : vector<1x384xf32>
    %174 = tpu.matmul %168, %173, %cst_55 {dimension_numbers = #tpu.dot_dimension_numbers<[1], [0], [0], [1], [0, 0, 1, 1], [], []>} : vector<1x128xf32>, vector<128x384xf32>, vector<1x384xf32> -> vector<1x384xf32>
    %175 = arith.addf %174, %7 : vector<1x384xf32>
    %176 = vector.extract_strided_slice %172 {offsets = [0, 0], sizes = [1, 256], strides = [1, 1]} : vector<1x384xf32> to vector<1x256xf32>
    %177 = vector.extract_strided_slice %175 {offsets = [0, 0], sizes = [1, 256], strides = [1, 1]} : vector<1x384xf32> to vector<1x256xf32>
    %178 = arith.addf %176, %177 : vector<1x256xf32>
    %179 = arith.negf %178 : vector<1x256xf32>
    %180 = math.exp %179 : vector<1x256xf32>
    %cst_56 = arith.constant 1.000000e+00 : f32
    %181 = vector.broadcast %cst_56 : f32 to vector<1x256xf32>
    %182 = arith.addf %181, %180 : vector<1x256xf32>
    %183 = arith.divf %181, %182 : vector<1x256xf32>
    %184 = vector.extract_strided_slice %183 {offsets = [0, 0], sizes = [1, 128], strides = [1, 1]} : vector<1x256xf32> to vector<1x128xf32>
    %185 = vector.extract_strided_slice %183 {offsets = [0, 128], sizes = [1, 128], strides = [1, 1]} : vector<1x256xf32> to vector<1x128xf32>
    %186 = vector.extract_strided_slice %172 {offsets = [0, 256], sizes = [1, 128], strides = [1, 1]} : vector<1x384xf32> to vector<1x128xf32>
    %187 = vector.extract_strided_slice %175 {offsets = [0, 256], sizes = [1, 128], strides = [1, 1]} : vector<1x384xf32> to vector<1x128xf32>
    %188 = arith.mulf %184, %187 : vector<1x128xf32>
    %189 = arith.addf %186, %188 : vector<1x128xf32>
    %190 = math.tanh %189 : vector<1x128xf32>
    %cst_57 = arith.constant 1.000000e+00 : f32
    %191 = vector.broadcast %cst_57 : f32 to vector<1x128xf32>
    %192 = arith.subf %191, %185 : vector<1x128xf32>
    %193 = arith.mulf %192, %190 : vector<1x128xf32>
    %194 = arith.mulf %185, %168 : vector<1x128xf32>
    %195 = arith.addf %193, %194 : vector<1x128xf32>
    %196 = arith.index_cast %c6_i32 : i32 to index
    %c0_58 = arith.constant 0 : index
    %197 = vector.load %arg11[%196, %c0_58] : memref<8x128xf32, #tpu.memory_space<vmem>>, vector<1x128xf32>
    tpu.vector_store %arg11[%196, %c0_58], %195 {strides = array<i32>} : memref<8x128xf32, #tpu.memory_space<vmem>>, vector<1x128xf32>,
    %c7_i32 = arith.constant 7 : i32
    %198 = arith.index_cast %c7_i32 : i32 to index
    %c0_59 = arith.constant 0 : index
    %199 = vector.load %arg10[%198, %c0_59] : memref<8x384xf32, #tpu.memory_space<vmem>>, vector<1x384xf32>
    %c0_60 = arith.constant 0 : index
    %c0_61 = arith.constant 0 : index
    %200 = vector.load %arg4[%c0_60, %c0_61] : memref<128x384xf32, #tpu.memory_space<vmem>>, vector<128x384xf32>
    %cst_62 = arith.constant dense<0.000000e+00> : vector<1x384xf32>
    %201 = tpu.matmul %195, %200, %cst_62 {dimension_numbers = #tpu.dot_dimension_numbers<[1], [0], [0], [1], [0, 0, 1, 1], [], []>} : vector<1x128xf32>, vector<128x384xf32>, vector<1x384xf32> -> vector<1x384xf32>
    %202 = arith.addf %201, %7 : vector<1x384xf32>
    %203 = vector.extract_strided_slice %199 {offsets = [0, 0], sizes = [1, 256], strides = [1, 1]} : vector<1x384xf32> to vector<1x256xf32>
    %204 = vector.extract_strided_slice %202 {offsets = [0, 0], sizes = [1, 256], strides = [1, 1]} : vector<1x384xf32> to vector<1x256xf32>
    %205 = arith.addf %203, %204 : vector<1x256xf32>
    %206 = arith.negf %205 : vector<1x256xf32>
    %207 = math.exp %206 : vector<1x256xf32>
    %cst_63 = arith.constant 1.000000e+00 : f32
    %208 = vector.broadcast %cst_63 : f32 to vector<1x256xf32>
    %209 = arith.addf %208, %207 : vector<1x256xf32>
    %210 = arith.divf %208, %209 : vector<1x256xf32>
    %211 = vector.extract_strided_slice %210 {offsets = [0, 0], sizes = [1, 128], strides = [1, 1]} : vector<1x256xf32> to vector<1x128xf32>
    %212 = vector.extract_strided_slice %210 {offsets = [0, 128], sizes = [1, 128], strides = [1, 1]} : vector<1x256xf32> to vector<1x128xf32>
    %213 = vector.extract_strided_slice %199 {offsets = [0, 256], sizes = [1, 128], strides = [1, 1]} : vector<1x384xf32> to vector<1x128xf32>
    %214 = vector.extract_strided_slice %202 {offsets = [0, 256], sizes = [1, 128], strides = [1, 1]} : vector<1x384xf32> to vector<1x128xf32>
    %215 = arith.mulf %211, %214 : vector<1x128xf32>
    %216 = arith.addf %213, %215 : vector<1x128xf32>
    %217 = math.tanh %216 : vector<1x128xf32>
    %cst_64 = arith.constant 1.000000e+00 : f32
    %218 = vector.broadcast %cst_64 : f32 to vector<1x128xf32>
    %219 = arith.subf %218, %212 : vector<1x128xf32>
    %220 = arith.mulf %219, %217 : vector<1x128xf32>
    %221 = arith.mulf %212, %195 : vector<1x128xf32>
    %222 = arith.addf %220, %221 : vector<1x128xf32>
    %223 = arith.index_cast %c7_i32 : i32 to index
    %c0_65 = arith.constant 0 : index
    %224 = vector.load %arg11[%223, %c0_65] : memref<8x128xf32, #tpu.memory_space<vmem>>, vector<1x128xf32>
    tpu.vector_store %arg11[%223, %c0_65], %222 {strides = array<i32>} : memref<8x128xf32, #tpu.memory_space<vmem>>, vector<1x128xf32>,
    %c8_i32 = arith.constant 8 : i32
    %c0_66 = arith.constant 0 : index
    %c0_67 = arith.constant 0 : index
    %225 = vector.load %arg9[%c0_66, %c0_67] : memref<1x128xf32, #tpu.memory_space<vmem>>, vector<1x128xf32>
    tpu.vector_store %arg9[%c0_66, %c0_67], %222 {strides = array<i32>} : memref<1x128xf32, #tpu.memory_space<vmem>>, vector<1x128xf32>,
    %c0_68 = arith.constant 0 : index
    %c0_69 = arith.constant 0 : index
    %226 = vector.load %arg11[%c0_68, %c0_69] : memref<8x128xf32, #tpu.memory_space<vmem>>, vector<8x128xf32>
    %c0_70 = arith.constant 0 : index
    %c0_71 = arith.constant 0 : index
    %227 = vector.load %arg6[%c0_70, %c0_71] : memref<128x128xf32, #tpu.memory_space<vmem>>, vector<128x128xf32>
    %cst_72 = arith.constant dense<0.000000e+00> : vector<8x128xf32>
    %228 = tpu.matmul %226, %227, %cst_72 {dimension_numbers = #tpu.dot_dimension_numbers<[1], [0], [0], [1], [0, 0, 1, 1], [], []>} : vector<8x128xf32>, vector<128x128xf32>, vector<8x128xf32> -> vector<8x128xf32>
    %c0_73 = arith.constant 0 : index
    %c0_74 = arith.constant 0 : index
    %229 = vector.load %arg7[%c0_73, %c0_74] : memref<1x128xf32, #tpu.memory_space<vmem>>, vector<1x128xf32>
    %230 = vector.broadcast %229 : vector<1x128xf32> to vector<8x128xf32>
    %231 = arith.addf %228, %230 : vector<8x128xf32>
    %c0_75 = arith.constant 0 : index
    %c0_76 = arith.constant 0 : index
    %232 = vector.load %arg8[%c0_75, %c0_76] : memref<8x128xf32, #tpu.memory_space<vmem>>, vector<8x128xf32>
    tpu.vector_store %arg8[%c0_75, %c0_76], %231 {strides = array<i32>} : memref<8x128xf32, #tpu.memory_space<vmem>>, vector<8x128xf32>,
    return
  }
  func.func @transform_0(%arg0: i32) -> (i32, i32) {
    %c0_i32 = arith.constant 0 : i32
    %c0_i32_0 = arith.constant 0 : i32
    %c0_i32_1 = arith.constant 0 : i32
    return %c0_i32, %c0_i32_0 : i32, i32
  }
  func.func @transform_1(%arg0: i32) -> (i32, i32) {
    %c0_i32 = arith.constant 0 : i32
    %c0_i32_0 = arith.constant 0 : i32
    %c0_i32_1 = arith.constant 0 : i32
    return %c0_i32, %c0_i32_0 : i32, i32
  }
  func.func @transform_2(%arg0: i32) -> (i32, i32) {
    %c0_i32 = arith.constant 0 : i32
    %c0_i32_0 = arith.constant 0 : i32
    %c0_i32_1 = arith.constant 0 : i32
    return %c0_i32, %c0_i32_0 : i32, i32
  }
  func.func @transform_3(%arg0: i32) -> (i32, i32) {
    %c0_i32 = arith.constant 0 : i32
    %c0_i32_0 = arith.constant 0 : i32
    %c0_i32_1 = arith.constant 0 : i32
    return %c0_i32, %c0_i32_0 : i32, i32
  }
  func.func @transform_4(%arg0: i32) -> (i32, i32) {
    %c0_i32 = arith.constant 0 : i32
    %c0_i32_0 = arith.constant 0 : i32
    %c0_i32_1 = arith.constant 0 : i32
    return %c0_i32, %c0_i32_0 : i32, i32
  }
  func.func @transform_5(%arg0: i32) -> (i32, i32) {
    %c0_i32 = arith.constant 0 : i32
    %c0_i32_0 = arith.constant 0 : i32
    %c0_i32_1 = arith.constant 0 : i32
    return %c0_i32, %c0_i32_0 : i32, i32
  }
  func.func @transform_6(%arg0: i32) -> (i32, i32) {
    %c0_i32 = arith.constant 0 : i32
    %c0_i32_0 = arith.constant 0 : i32
    %c0_i32_1 = arith.constant 0 : i32
    return %c0_i32, %c0_i32_0 : i32, i32
  }
  func.func @transform_7(%arg0: i32) -> (i32, i32) {
    %c0_i32 = arith.constant 0 : i32
    %c0_i32_0 = arith.constant 0 : i32
    %c0_i32_1 = arith.constant 0 : i32
    return %c0_i32, %c0_i32_0 : i32, i32
  }
  func.func @transform_8(%arg0: i32) -> (i32, i32) {
    %c0_i32 = arith.constant 0 : i32
    %c0_i32_0 = arith.constant 0 : i32
    %c0_i32_1 = arith.constant 0 : i32
    return %c0_i32, %c0_i32_0 : i32, i32
  }
}

</mosaic_0001>

<bundles_post_ra>
// kernel: tpu_custom_call.1
= control target key start
LH: loop header
LB: loop body
LE: loop exit
PB: predicated region body
PF: predicated region fallthrough
CT: control target
= control target key end

     0   :  { %14 = vsyncpa [#allocation5], 0  ;;  %s4181_s0 = inlined_call_operand.hbm [shape: f32[8,128], index: 0, kind: input, shape index: {}]   ;;  %s4182_s1 = inlined_call_operand.vmem [shape: f32[1,128], index: 1, kind: input, shape index: {}]   ;;  %s4183_s2 = inlined_call_operand.hbm [shape: f32[128,384], index: 2, kind: input, shape index: {}]   ;;  %s4184_s3 = inlined_call_operand.hbm [shape: f32[128,384], index: 3, kind: input, shape index: {}]   ;;  %s4185_s4 = inlined_call_operand.vmem [shape: f32[2,384], index: 4, kind: input, shape index: {}]   ;;  %s4186_s5 = inlined_call_operand.hbm [shape: f32[128,128], index: 5, kind: input, shape index: {}]   ;;  %s4187_s6 = inlined_call_operand.vmem [shape: f32[1,128], index: 6, kind: input, shape index: {}]   ;;  %s4188_s7 = inlined_call_operand.hbm [shape: f32[8,128], index: 7, kind: output, shape index: {0}]   ;;  %s4189_s8 = inlined_call_operand.hbm [shape: f32[1,128], index: 8, kind: output, shape index: {1}]  }
   0x1   :  { %15 = vsyncpa [#allocation8], 0 }
   0x2   :  { %16 = vsyncpa [#allocation11], 0 }
   0x3   :  { %17 = vsyncpa [#allocation6], 0 }
   0x4   :  { %18 = vsyncpa [#allocation14], 0  ;;  %s3540_s27 = smov [#allocation7]   ;;  %s3398_s9 = scalar_lea.hbm %s4183_s2, 6144 }
   0x5   :  { %s36_s28 = sshll.u32 %s3540_s27, 4  ;;  %p3399_p0 = scmp.ne.s32.totalorder %s4183_s2, %s3398_s9  ;;  %s37_s28 = int_to_ptr.vmem [resolvable:$true] %s36_s28 }
   0x6   :  { %p3402_p1 = scmp.lt.u32.totalorder %s3398_s9, %s4183_s2 }
   0x8   :  { %p3404_p2 = pnand %p3402_p1, %p3399_p0 }
   0xa   :  { %3407 = shalt.err (!%p3404_p2)
}
   0xb   :  { %s3408_s14 = scalar_lea.vmem %s37_s28, 6144  ;;  %p3413_p4 = scmp.lt.s32.totalorder %s37_s28, %s37_s28 }
   0xc   :  { %p3409_p3 = scmp.ne.s32.totalorder %s37_s28, %s3408_s14  ;;  %p3414_p5 = scmp.lt.s32.totalorder %s3408_s14, %s3408_s14 }
   0xe   :  { %p3415_p6 = por %p3414_p5, %p3413_p4 }
  0x10   :  { %p3416_p7 = pnand %p3415_p6, %p3409_p3 }
  0x12   :  { %3419 = shalt.err (!%p3416_p7)
}
  0x13   :  { %s3541_s15 = smov 384   ;;  %s3542_s16 = smov 24  }
  0x14   :  { %42 = dma.hbm_to_vmem [thread:$0]  %s4183_s2, 6144, %s37_s28, [#allocation8], %s3541_s15, %s3541_s15, %s3542_s16  }
  0x15   :  { %s3543_s19 = smov [#allocation4]   ;;  %s3544_s21 = smov [#allocation9]  }
  0x16   :  { %s25_s20 = sshll.u32 %s3543_s19, 4  ;;  %s48_s22 = sshll.u32 %s3544_s21, 4  ;;  %s26_s20 = int_to_ptr.vmem [resolvable:$true] %s25_s20  ;;  %s49_s22 = int_to_ptr.vmem [resolvable:$true] %s48_s22 }
  0x17   :  { %s3420_s25 = scalar_lea.hbm %s4181_s0, 128 }
  0x18   :  { %p3421_p8 = scmp.ne.s32.totalorder %s4181_s0, %s3420_s25  ;;  %p3424_p9 = scmp.lt.u32.totalorder %s3420_s25, %s4181_s0 }
  0x1a   :  { %p3426_p10 = pnand %p3424_p9, %p3421_p8 }
  0x1c   :  { %3429 = shalt.err (!%p3426_p10)
}
  0x1d   :  { %s3430_s2 = scalar_lea.vmem %s26_s20, 128  ;;  %p3435_p12 = scmp.lt.s32.totalorder %s26_s20, %s26_s20 }
  0x1e   :  { %p3431_p11 = scmp.ne.s32.totalorder %s26_s20, %s3430_s2  ;;  %p3436_p13 = scmp.lt.s32.totalorder %s3430_s2, %s3430_s2 }
  0x20   :  { %p3437_p0 = por %p3436_p13, %p3435_p12 }
  0x22   :  { %p3438_p1 = pnand %p3437_p0, %p3431_p11 }
  0x24   :  { %3441 = shalt.err (!%p3438_p1)
}
  0x25   :  { %28 = dma.hbm_to_vmem [thread:$0]  %s4181_s0, 128, %s26_s20, [#allocation5]  }
  0x26   :  { %s3442_s12 = scalar_lea.hbm %s4184_s3, 6144 }
  0x27   :  { %p3443_p2 = scmp.ne.s32.totalorder %s4184_s3, %s3442_s12  ;;  %p3446_p3 = scmp.lt.u32.totalorder %s3442_s12, %s4184_s3 }
  0x29   :  { %p3448_p4 = pnand %p3446_p3, %p3443_p2 }
  0x2b   :  { %3451 = shalt.err (!%p3448_p4)
}
  0x2c   :  { %s3452_s19 = scalar_lea.vmem %s49_s22, 6144  ;;  %p3457_p6 = scmp.lt.s32.totalorder %s49_s22, %s49_s22 }
  0x2d   :  { %p3453_p5 = scmp.ne.s32.totalorder %s49_s22, %s3452_s19  ;;  %p3458_p7 = scmp.lt.s32.totalorder %s3452_s19, %s3452_s19 }
  0x2f   :  { %p3459_p8 = por %p3458_p7, %p3457_p6 }
  0x31   :  { %p3460_p9 = pnand %p3459_p8, %p3453_p5 }
  0x33   :  { %3463 = shalt.err (!%p3460_p9)
}
  0x34   :  { %54 = dma.hbm_to_vmem [thread:$0]  %s4184_s3, 6144, %s49_s22, [#allocation8], %s3541_s15, %s3541_s15, %s3542_s16  }
  0x35   :  { %s3545_s21 = smov [#allocation10]   ;;  %s3464_s26 = scalar_lea.hbm %s4186_s5, 2048 }
  0x36   :  { %s62_s23 = sshll.u32 %s3545_s21, 4  ;;  %p3465_p10 = scmp.ne.s32.totalorder %s4186_s5, %s3464_s26  ;;  %s63_s23 = int_to_ptr.vmem [resolvable:$true] %s62_s23 }
  0x37   :  { %p3468_p11 = scmp.lt.u32.totalorder %s3464_s26, %s4186_s5 }
  0x39   :  { %p3470_p12 = pnand %p3468_p11, %p3465_p10 }
  0x3b   :  { %3473 = shalt.err (!%p3470_p12)
}
  0x3c   :  { %s3474_s28 = scalar_lea.vmem %s63_s23, 2048  ;;  %p3479_p0 = scmp.lt.s32.totalorder %s63_s23, %s63_s23 }
  0x3d   :  { %p3475_p13 = scmp.ne.s32.totalorder %s63_s23, %s3474_s28  ;;  %p3480_p1 = scmp.lt.s32.totalorder %s3474_s28, %s3474_s28 }
  0x3f   :  { %p3481_p2 = por %p3480_p1, %p3479_p0 }
  0x41   :  { %p3482_p3 = pnand %p3481_p2, %p3475_p13 }
  0x43   :  { %3485 = shalt.err (!%p3482_p3)
}
  0x44   :  { %s3546_s3 = smov 128   ;;  %s3547_s15 = smov 8  }
  0x45   :  { %68 = dma.hbm_to_vmem [thread:$0]  %s4186_s5, 2048, %s63_s23, [#allocation11], %s3546_s3, %s3546_s3, %s3547_s15  }
  0x46   :  { %3530 = dma.done.wait [#allocation5], 128  }
  0x47   :  { %3531 = vsyncadd [#allocation5], 4294967168 }
  0x48   :  { %3532 = dma.done.wait [#allocation8], 12288  }
  0x49   :  { %3533 = vsyncadd [#allocation8], 4294955008 }
  0x4a   :  { %3534 = dma.done.wait [#allocation11], 2048  }
  0x4b   :  { %3535 = vsyncadd [#allocation11], 4294965248  ;;  %v3548_v0 = vmov 0.0|0.0   ;;  %v3549_v1 = vmov 0.0   ;;  %vm3550_vm0 = vmmov 0   ;;  %v85_v2 = vld [vmem:[#allocation7 + $0x8] sm:$0xff] }
  0x4c   :  { %2840 = vmatprep.subr.bf16.mxu1 %v3548_v0  ;;  %213 = vmatprep.mubr.f32.mxu0 %v3549_v1  ;;  %v88_v3 = vld [vmem:[#allocation7 + $0x20] sm:$0xff]  ;;  %v87_v6 = vld [vmem:[#allocation7 + $0x18] sm:$0xff]  ;;  %v86_v7 = vld [vmem:[#allocation7 + $0x10] sm:$0xff] }
  0x4d   :  { %2490 = vmatprep.mubr.msk.f32.mxu1 %vm3550_vm0, %v3549_v1  ;;  %v84_v4 = vld [vmem:[#allocation7] sm:$0xff]  ;;  %v2808_v5 = vpack.c.bf16 %v88_v3, %v85_v2  ;;  %v89_v8 = vld [vmem:[#allocation7 + $0x28] sm:$0xff]  ;;  %v91_v11 = vld [vmem:[#allocation7 + $0x38] sm:$0xff] }
  0x4e   :  { %v2810_v9 = vpack.c.bf16 %v87_v6, %v84_v4  ;;  %v2841_v10 = vpack.c.bf16 %v89_v8, %v86_v7  ;;  %v94_v12 = vld [vmem:[#allocation7 + $0x50] sm:$0xff]  ;;  %v93_v15 = vld [vmem:[#allocation7 + $0x48] sm:$0xff]  ;;  %v92_v16 = vld [vmem:[#allocation7 + $0x40] sm:$0xff] }
  0x4f   :  { %v90_v13 = vld [vmem:[#allocation7 + $0x30] sm:$0xff]  ;;  %2809 = vmatprep.subr.bf16.mxu0 %v2808_v5  ;;  %v2812_v14 = vpack.c.bf16 %v94_v12, %v91_v11  ;;  %v95_v17 = vld [vmem:[#allocation7 + $0x58] sm:$0xff]  ;;  %v97_v20 = vld [vmem:[#allocation7 + $0x68] sm:$0xff] }
  0x50   :  { %2811 = vmatpush1.bf16.msra.mxu0 %v2810_v9  ;;  %2842 = vmatpush3.bf16.msra.mxu1 %v2841_v10  ;;  %v2814_v18 = vpack.c.bf16 %v93_v15, %v90_v13  ;;  %v2844_v19 = vpack.c.bf16 %v95_v17, %v92_v16  ;;  %v100_v21 = vld [vmem:[#allocation7 + $0x80] sm:$0xff]  ;;  %v99_v24 = vld [vmem:[#allocation7 + $0x78] sm:$0xff]  ;;  %v98_v25 = vld [vmem:[#allocation7 + $0x70] sm:$0xff] }
  0x51   :  { %v96_v22 = vld [vmem:[#allocation7 + $0x60] sm:$0xff]  ;;  %2813 = vmatprep.subr.bf16.mxu0 %v2812_v14  ;;  %2843 = vmatprep.subr.bf16.mxu1 %v3548_v0  ;;  %v2816_v23 = vpack.c.bf16 %v100_v21, %v97_v20  ;;  %v101_v26 = vld [vmem:[#allocation7 + $0x88] sm:$0xff]  ;;  %v103_v27 = vld [vmem:[#allocation7 + $0x98] sm:$0xff] }
  0x52   :  { %v106_v28 = vld [vmem:[#allocation7 + $0xb0] sm:$0xff]  ;;  %v2818_v29 = vpack.c.bf16 %v99_v24, %v96_v22  ;;  %v2847_v30 = vpack.c.bf16 %v101_v26, %v98_v25  ;;  %v105_v33 = vld [vmem:[#allocation7 + $0xa8] sm:$0xff]  ;;  %v104_v34 = vld [vmem:[#allocation7 + $0xa0] sm:$0xff] }
  0x53   :  { %v102_v31 = vld [vmem:[#allocation7 + $0x90] sm:$0xff]  ;;  %v2820_v32 = vpack.c.bf16 %v106_v28, %v103_v27  ;;  %v107_v35 = vld [vmem:[#allocation7 + $0xb8] sm:$0xff]  ;;  %v109_v36 = vld [vmem:[#allocation7 + $0xc8] sm:$0xff] }
  0x54   :  { %2815 = vmatpush1.bf16.msra.mxu0 %v2814_v18  ;;  %2845 = vmatpush3.bf16.msra.mxu1 %v2844_v19  ;;  %v112_v37 = vld [vmem:[#allocation7 + $0xe0] sm:$0xff]  ;;  %v2822_v38 = vpack.c.bf16 %v105_v33, %v102_v31  ;;  %v2850_v39 = vpack.c.bf16 %v107_v35, %v104_v34  ;;  %v111_v42 = vld [vmem:[#allocation7 + $0xd8] sm:$0xff]  ;;  %v110_v43 = vld [vmem:[#allocation7 + $0xd0] sm:$0xff] }
  0x55   :  { %2817 = vmatprep.subr.bf16.mxu0 %v2816_v23  ;;  %2846 = vmatprep.subr.bf16.mxu1 %v3548_v0  ;;  %v108_v40 = vld [vmem:[#allocation7 + $0xc0] sm:$0xff]  ;;  %v2824_v41 = vpack.c.bf16 %v112_v37, %v109_v36  ;;  %v113_v44 = vld [vmem:[#allocation7 + $0xe8] sm:$0xff]  ;;  %v115_v45 = vld [vmem:[#allocation7 + $0xf8] sm:$0xff] }
  0x56   :  { %v118_v46 = vld [vmem:[#allocation7 + $0x110] sm:$0xff]  ;;  %v2826_v47 = vpack.c.bf16 %v111_v42, %v108_v40  ;;  %v2853_v48 = vpack.c.bf16 %v113_v44, %v110_v43  ;;  %v117_v51 = vld [vmem:[#allocation7 + $0x108] sm:$0xff]  ;;  %v116_v52 = vld [vmem:[#allocation7 + $0x100] sm:$0xff] }
  0x57   :  { %v114_v49 = vld [vmem:[#allocation7 + $0xf0] sm:$0xff]  ;;  %v2828_v50 = vpack.c.bf16 %v118_v46, %v115_v45  ;;  %v119_v53 = vld [vmem:[#allocation7 + $0x118] sm:$0xff]  ;;  %v121_v54 = vld [vmem:[#allocation7 + $0x128] sm:$0xff] }
  0x58   :  { %2819 = vmatpush1.bf16.msra.mxu0 %v2818_v29  ;;  %2848 = vmatpush3.bf16.msra.mxu1 %v2847_v30  ;;  %v124_v55 = vld [vmem:[#allocation7 + $0x140] sm:$0xff]  ;;  %v2830_v56 = vpack.c.bf16 %v117_v51, %v114_v49  ;;  %v2856_v57 = vpack.c.bf16 %v119_v53, %v116_v52  ;;  %v123_v60 = vld [vmem:[#allocation7 + $0x138] sm:$0xff]  ;;  %v122_v61 = vld [vmem:[#allocation7 + $0x130] sm:$0xff] }
  0x59   :  { %2821 = vmatprep.subr.bf16.mxu0 %v2820_v32  ;;  %2849 = vmatprep.subr.bf16.mxu1 %v3548_v0  ;;  %v120_v58 = vld [vmem:[#allocation7 + $0x120] sm:$0xff]  ;;  %v2832_v59 = vpack.c.bf16 %v124_v55, %v121_v54  ;;  %v125_v62 = vld [vmem:[#allocation7 + $0x148] sm:$0xff]  ;;  %v127_v63 = vld [vmem:[#allocation7 + $0x158] sm:$0xff] }
  0x5a   :  { %v130_v2 = vld [vmem:[#allocation7 + $0x170] sm:$0xff]  ;;  %v2834_v3 = vpack.c.bf16 %v123_v60, %v120_v58  ;;  %v2859_v4 = vpack.c.bf16 %v125_v62, %v122_v61  ;;  %v129_v7 = vld [vmem:[#allocation7 + $0x168] sm:$0xff]  ;;  %v128_v8 = vld [vmem:[#allocation7 + $0x160] sm:$0xff] }
  0x5b   :  { %v126_v5 = vld [vmem:[#allocation7 + $0x150] sm:$0xff]  ;;  %v2836_v6 = vpack.c.bf16 %v130_v2, %v127_v63  ;;  %v131_v9 = vld [vmem:[#allocation7 + $0x178] sm:$0xff]  ;;  %v298_v10 = vld [vmem:[#allocation9 + $0x8] sm:$0xff] }
  0x5c   :  { %2823 = vmatpush1.bf16.msra.mxu0 %v2822_v38  ;;  %2851 = vmatpush3.bf16.msra.mxu1 %v2850_v39  ;;  %v301_v11 = vld [vmem:[#allocation9 + $0x20] sm:$0xff]  ;;  %v2838_v12 = vpack.c.bf16 %v129_v7, %v126_v5  ;;  %v2862_v13 = vpack.c.bf16 %v131_v9, %v128_v8  ;;  %v300_v16 = vld [vmem:[#allocation9 + $0x18] sm:$0xff]  ;;  %v307_v18 = vld [vmem:[#allocation9 + $0x50] sm:$0xff] }
  0x5d   :  { %2825 = vmatprep.subr.bf16.mxu0 %v2824_v41  ;;  %2852 = vmatprep.subr.bf16.mxu1 %v3548_v0  ;;  %v3664_v14 = vpack.c.bf16 %v301_v11, %v298_v10  ;;  %v297_v15 = vld [vmem:[#allocation9] sm:$0xff]  ;;  %v304_v17 = vld [vmem:[#allocation9 + $0x38] sm:$0xff]  ;;  %v299_v19 = vld [vmem:[#allocation9 + $0x10] sm:$0xff] }
  0x5e   :  { %v302_v20 = vld [vmem:[#allocation9 + $0x28] sm:$0xff]  ;;  %v83_v21 = vld [vmem:[#allocation4] sm:$0xff]  ;;  %v3666_v22 = vpack.c.bf16 %v300_v16, %v297_v15  ;;  %v3669_v23 = vpack.c.bf16 %v307_v18, %v304_v17  ;;  %v303_v24 = vld [vmem:[#allocation9 + $0x30] sm:$0xff] }
  0x5f   :  { %v306_v25 = vld [vmem:[#allocation9 + $0x48] sm:$0xff]  ;;  %v3672_v27 = vpack.c.bf16 %v302_v20, %v299_v19  ;;  %v313_v28 = vld [vmem:[#allocation9 + $0x80] sm:$0xff]  ;;  %v308_v30 = vld [vmem:[#allocation9 + $0x58] sm:$0xff] }
  0x60   :  { %2827 = vmatpush1.bf16.msra.mxu0 %v2826_v47  ;;  %2854 = vmatpush3.bf16.msra.mxu1 %v2853_v48  ;;  %v310_v26 = vld [vmem:[#allocation9 + $0x68] sm:$0xff]  ;;  %v305_v29 = vld [vmem:[#allocation9 + $0x40] sm:$0xff]  ;;  %v3675_v31 = vpack.c.bf16 %v306_v25, %v303_v24  ;;  %v312_v34 = vld [vmem:[#allocation9 + $0x78] sm:$0xff] }
  0x61   :  { %2829 = vmatprep.subr.bf16.mxu0 %v2828_v50  ;;  %2855 = vmatprep.subr.bf16.mxu1 %v3548_v0  ;;  %v3679_v32 = vpack.c.bf16 %v313_v28, %v310_v26  ;;  %v309_v33 = vld [vmem:[#allocation9 + $0x60] sm:$0xff]  ;;  %v316_v35 = vld [vmem:[#allocation9 + $0x98] sm:$0xff]  ;;  %v3682_v36 = vpack.c.bf16 %v308_v30, %v305_v29  ;;  %v319_v37 = vld [vmem:[#allocation9 + $0xb0] sm:$0xff]  ;;  %v134_v28 = vlaneseq }
  0x62   :  { %v311_v38 = vld [vmem:[#allocation9 + $0x70] sm:$0xff]  ;;  %v314_v39 = vld [vmem:[#allocation9 + $0x88] sm:$0xff]  ;;  %v3688_v40 = vpack.c.bf16 %v312_v34, %v309_v33  ;;  %v3691_v41 = vpack.c.bf16 %v319_v37, %v316_v35  ;;  %v325_v46 = vld [vmem:[#allocation9 + $0xe0] sm:$0xff] }
  0x63   :  { %v315_v42 = vld [vmem:[#allocation9 + $0x90] sm:$0xff]  ;;  %v318_v43 = vld [vmem:[#allocation9 + $0xa8] sm:$0xff]  ;;  %v3694_v45 = vpack.c.bf16 %v314_v39, %v311_v38  ;;  %v317_v47 = vld [vmem:[#allocation9 + $0xa0] sm:$0xff]  ;;  %v135_v29 = vshrl.u32 %v134_v28, 7 }
  0x64   :  { %2831 = vmatpush1.bf16.msra.mxu0 %v2830_v56  ;;  %2857 = vmatpush3.bf16.msra.mxu1 %v2856_v57  ;;  %v322_v44 = vld [vmem:[#allocation9 + $0xc8] sm:$0xff]  ;;  %v320_v48 = vld [vmem:[#allocation9 + $0xb8] sm:$0xff]  ;;  %v3698_v49 = vpack.c.bf16 %v318_v43, %v315_v42  ;;  %v321_v51 = vld [vmem:[#allocation9 + $0xc0] sm:$0xff] }
  0x65   :  { %2833 = vmatprep.subr.bf16.mxu0 %v2832_v59  ;;  %2858 = vmatprep.subr.bf16.mxu1 %v3548_v0  ;;  %v3701_v50 = vpack.c.bf16 %v325_v46, %v322_v44  ;;  %v324_v52 = vld [vmem:[#allocation9 + $0xd8] sm:$0xff]  ;;  %v3704_v54 = vpack.c.bf16 %v320_v48, %v317_v47  ;;  %v331_v55 = vld [vmem:[#allocation9 + $0x110] sm:$0xff]  ;;  %v326_v57 = vld [vmem:[#allocation9 + $0xe8] sm:$0xff]  ;;  %v136_v30 = vsub.s32 0, %v135_v29  ;;  %v144_v33 = vsub.s32 2, %v135_v29 }
  0x66   :  { %v328_v53 = vld [vmem:[#allocation9 + $0xf8] sm:$0xff]  ;;  %v323_v56 = vld [vmem:[#allocation9 + $0xd0] sm:$0xff]  ;;  %v3708_v58 = vpack.c.bf16 %v324_v52, %v321_v51  ;;  %v330_v61 = vld [vmem:[#allocation9 + $0x108] sm:$0xff]  ;;  %v140_v35 = vsub.s32 1, %v135_v29 }
  0x67   :  { %v3711_v59 = vpack.c.bf16 %v331_v55, %v328_v53  ;;  %v327_v60 = vld [vmem:[#allocation9 + $0xf0] sm:$0xff]  ;;  %v334_v62 = vld [vmem:[#allocation9 + $0x128] sm:$0xff]  ;;  %v3714_v63 = vpack.c.bf16 %v326_v57, %v323_v56  ;;  %v337_v2 = vld [vmem:[#allocation9 + $0x140] sm:$0xff]  ;;  %v3551_v53 = vmov 1966171168  }
  0x68   :  { %2835 = vmatpush1.bf16.msra.mxu0 %v2834_v3  ;;  %2860 = vmatpush3.bf16.msra.mxu1 %v2859_v4  ;;  %v329_v3 = vld [vmem:[#allocation9 + $0x100] sm:$0xff]  ;;  %v332_v4 = vld [vmem:[#allocation9 + $0x118] sm:$0xff]  ;;  %v3718_v5 = vpack.c.bf16 %v330_v61, %v327_v60  ;;  %v343_v11 = vld [vmem:[#allocation9 + $0x170] sm:$0xff]  ;;  %v506_v55 = vunpack.c.l.s4 %v3551_v53 }
  0x69   :  { %2837 = vmatprep.subr.bf16.mxu0 %v2836_v6  ;;  %2861 = vmatprep.subr.bf16.mxu1 %v3548_v0  ;;  %v3721_v6 = vpack.c.bf16 %v337_v2, %v334_v62  ;;  %v333_v7 = vld [vmem:[#allocation9 + $0x120] sm:$0xff]  ;;  %v336_v8 = vld [vmem:[#allocation9 + $0x138] sm:$0xff]  ;;  %v3724_v10 = vpack.c.bf16 %v332_v4, %v329_v3  ;;  %v339_v17 = vld [vmem:[#allocation9 + $0x150] sm:$0xff] }
  0x6a   :  { %v340_v9 = vld [vmem:[#allocation9 + $0x158] sm:$0xff]  ;;  %v3728_v15 = vpack.c.bf16 %v336_v8, %v333_v7  ;;  %v342_v18 = vld [vmem:[#allocation9 + $0x168] sm:$0xff]  ;;  %v341_v20 = vld [vmem:[#allocation9 + $0x160] sm:$0xff]  ;;  %v507_v57 = vunpack.c.0.s8 %v506_v55 }
  0x6b   :  { %v3731_v16 = vpack.c.bf16 %v343_v11, %v340_v9  ;;  %v3738_v24 = vpack.c.bf16 %v342_v18, %v339_v17  ;;  %v3749_v26 = vld [vmem:[%s4182_s1] sm:$0x1]  ;;  %v2278_v52 = vld [vmem:[%s4185_s4 + $0x1] ss:$2 sm:$0x7] }
  0x6c   :  { %2839 = vmatpush1.bf16.msra.mxu0 %v2838_v12  ;;  %2863 = vmatpush3.bf16.msra.mxu1 %v2862_v13  ;;  %v335_v12 = vld [vmem:[#allocation9 + $0x130] sm:$0xff]  ;;  %v338_v13 = vld [vmem:[#allocation9 + $0x148] sm:$0xff]  ;;  %v132_v34 = vld [vmem:[%s4185_s4] ss:$2 sm:$0x7]  ;;  %v3797_v56 = vrot.slane %v2278_v52, %v136_v30  ;;  %v3799_v60 = vrot.slane %v2278_v52, %v140_v35  ;;  %v3802_v4 = vsub.s32 %v507_v57, %v135_v29  ;;  %s3552_s4 = smov [#allocation13]  }
  0x6d   :  { %2865 = vmatprep.subr.bf16.mxu0 %v3664_v14  ;;  %2896 = vmatprep.subr.bf16.mxu1 %v3548_v0  ;;  %v3734_v19 = vpack.c.bf16 %v338_v13, %v335_v12  ;;  %v137_v37 = vrot.slane %v132_v34, %v136_v30  ;;  %v145_v38 = vrot.slane %v132_v34, %v144_v33  ;;  %s2263_s13 = sshll.u32 %s3552_s4, 4  ;;  %s2264_s13 = int_to_ptr.vmem [resolvable:$true] %s2263_s13 }
  0x6e   :  { %v141_v39 = vrot.slane %v132_v34, %v140_v35  ;;  %v3807_v28 = vrot.slane %v2278_v52, %v144_v33  ;;  %s3486_s14 = scalar_lea.vmem %s2264_s13, 16  ;;  %s3490_s17 = scalar_lea.vmem %s2264_s13, 32 }
  0x6f   :  { %214 = vmatmul.mubr.f32.vlgmr.msra.gmra.mrb[0].mxu0 %v83_v21  ;;  %2491 = vmatmul.mubr.f32.vlgmr.msra.gmra.mrb[0].mxu1 %v83_v21  ;;  %v344_v21 = vld [vmem:[#allocation9 + $0x178] sm:$0xff]  ;;  %p3487_p4 = scmp.ne.s32.totalorder %s2264_s13, %s3486_s14  ;;  %p3491_p5 = scmp.lt.s32.totalorder %s2264_s13, %s2264_s13 }
  0x70   :  { %2867 = vmatpush1.bf16.msra.mxu0 %v3666_v22  ;;  %425 = vmatprep.mubr.f32.mxu0 %v3549_v1  ;;  %v3742_v25 = vpack.c.bf16 %v344_v21, %v341_v20  ;;  %p3492_p6 = scmp.lt.s32.totalorder %s3490_s17, %s3486_s14 }
  0x71   :  { %2869 = vmatprep.subr.bf16.mxu0 %v3669_v23  ;;  %2898 = vmatpush3.bf16.msra.mxu1 %v3672_v27 }
  0x72   :  { %2899 = vmatprep.subr.bf16.mxu1 %v3548_v0  ;;  %2525 = vmatprep.mubr.msk.f32.mxu1 %vm3550_vm0, %v3549_v1  ;;  %p3493_p7 = por %p3492_p6, %p3491_p5 }
  0x74   :  { %2871 = vmatpush1.bf16.msra.mxu0 %v3675_v31  ;;  %p3494_p8 = pnand %p3493_p7, %p3487_p4 }
  0x75   :  { %2873 = vmatprep.subr.bf16.mxu0 %v3679_v32  ;;  %2901 = vmatpush3.bf16.msra.mxu1 %v3682_v36 }
  0x76   :  { %2902 = vmatprep.subr.bf16.mxu1 %v3548_v0 }
  0x78   :  { %2875 = vmatpush1.bf16.msra.mxu0 %v3688_v40 }
  0x79   :  { %2877 = vmatprep.subr.bf16.mxu0 %v3691_v41  ;;  %2904 = vmatpush3.bf16.msra.mxu1 %v3694_v45 }
  0x7a   :  { %2905 = vmatprep.subr.bf16.mxu1 %v3548_v0 }
  0x7c   :  { %2879 = vmatpush1.bf16.msra.mxu0 %v3698_v49 }
  0x7d   :  { %2881 = vmatprep.subr.bf16.mxu0 %v3701_v50  ;;  %2907 = vmatpush3.bf16.msra.mxu1 %v3704_v54 }
  0x7e   :  { %2908 = vmatprep.subr.bf16.mxu1 %v3548_v0 }
  0x80   :  { %2883 = vmatpush1.bf16.msra.mxu0 %v3708_v58 }
  0x81   :  { %2885 = vmatprep.subr.bf16.mxu0 %v3711_v59  ;;  %2910 = vmatpush3.bf16.msra.mxu1 %v3714_v63 }
  0x82   :  { %2911 = vmatprep.subr.bf16.mxu1 %v3548_v0 }
  0x84   :  { %2887 = vmatpush1.bf16.msra.mxu0 %v3718_v5 }
  0x85   :  { %2889 = vmatprep.subr.bf16.mxu0 %v3721_v6  ;;  %2913 = vmatpush3.bf16.msra.mxu1 %v3724_v10 }
  0x86   :  { %2914 = vmatprep.subr.bf16.mxu1 %v3548_v0 }
  0x88   :  { %2891 = vmatpush1.bf16.msra.mxu0 %v3728_v15 }
  0x89   :  { %2893 = vmatprep.subr.bf16.mxu0 %v3731_v16  ;;  %2916 = vmatpush3.bf16.msra.mxu1 %v3734_v19 }
  0x8a   :  { %2917 = vmatprep.subr.bf16.mxu1 %v3548_v0 }
  0x8c   :  { %2895 = vmatpush1.bf16.msra.mxu0 %v3738_v24 }
  0x8d   :  { %2919 = vmatpush3.bf16.msra.mxu1 %v3742_v25  ;;  %2921 = vmatprep.subr.bf16.mxu0 %v3664_v14 }
  0x8e   :  { %2952 = vmatprep.subr.bf16.mxu1 %v3548_v0 }
  0x8f   :  { %426 = vmatmul.mubr.f32.vlgmr.msra.gmra.mrb[2].mxu0 %v3749_v26 }
  0x90   :  { %2526 = vmatmul.mubr.f32.vlgmr.msra.gmra.mrb[2].mxu1 %v3749_v26  ;;  %2923 = vmatpush1.bf16.msra.mxu0 %v3666_v22 }
  0x91   :  { %2954 = vmatpush3.bf16.msra.mxu1 %v3672_v27  ;;  %2925 = vmatprep.subr.bf16.mxu0 %v3669_v23 }
  0x92   :  { %2955 = vmatprep.subr.bf16.mxu1 %v3548_v0  ;;  %655 = vmatprep.mubr.f32.mxu0 %v3549_v1 }
  0x93   :  { %2560 = vmatprep.mubr.msk.f32.mxu1 %vm3550_vm0, %v3549_v1 }
  0x94   :  { %2927 = vmatpush1.bf16.msra.mxu0 %v3675_v31 }
  0x95   :  { %2957 = vmatpush3.bf16.msra.mxu1 %v3682_v36  ;;  %2929 = vmatprep.subr.bf16.mxu0 %v3679_v32 }
  0x96   :  { %2958 = vmatprep.subr.bf16.mxu1 %v3548_v0 }
  0x98   :  { %2931 = vmatpush1.bf16.msra.mxu0 %v3688_v40 }
  0x99   :  { %2960 = vmatpush3.bf16.msra.mxu1 %v3694_v45  ;;  %2933 = vmatprep.subr.bf16.mxu0 %v3691_v41 }
  0x9a   :  { %2961 = vmatprep.subr.bf16.mxu1 %v3548_v0 }
  0x9c   :  { %2935 = vmatpush1.bf16.msra.mxu0 %v3698_v49 }
  0x9d   :  { %2963 = vmatpush3.bf16.msra.mxu1 %v3704_v54  ;;  %2937 = vmatprep.subr.bf16.mxu0 %v3701_v50 }
  0x9e   :  { %2964 = vmatprep.subr.bf16.mxu1 %v3548_v0 }
  0xa0   :  { %2939 = vmatpush1.bf16.msra.mxu0 %v3708_v58 }
  0xa1   :  { %2966 = vmatpush3.bf16.msra.mxu1 %v3714_v63  ;;  %2941 = vmatprep.subr.bf16.mxu0 %v3711_v59 }
  0xa2   :  { %2967 = vmatprep.subr.bf16.mxu1 %v3548_v0 }
  0xa4   :  { %2943 = vmatpush1.bf16.msra.mxu0 %v3718_v5 }
  0xa5   :  { %2969 = vmatpush3.bf16.msra.mxu1 %v3724_v10  ;;  %2945 = vmatprep.subr.bf16.mxu0 %v3721_v6 }
  0xa6   :  { %2970 = vmatprep.subr.bf16.mxu1 %v3548_v0 }
  0xa8   :  { %2947 = vmatpush1.bf16.msra.mxu0 %v3728_v15 }
  0xa9   :  { %2972 = vmatpush3.bf16.msra.mxu1 %v3734_v19  ;;  %2949 = vmatprep.subr.bf16.mxu0 %v3731_v16 }
  0xaa   :  { %2973 = vmatprep.subr.bf16.mxu1 %v3548_v0 }
  0xac   :  { %2951 = vmatpush1.bf16.msra.mxu0 %v3738_v24 }
  0xad   :  { %2975 = vmatpush3.bf16.msra.mxu1 %v3742_v25  ;;  %2977 = vmatprep.subr.bf16.mxu0 %v3664_v14 }
  0xae   :  { %3008 = vmatprep.subr.bf16.mxu1 %v3548_v0 }
 0x142   :  { %v215_v42 = vpop.f32.mrb[0].mxu0  ;;  %v286_v43 = vpop.f32.mrb[0].mxu1 }
 0x143   :  { %v216_v44 = vadd.f32 %v215_v42, %v137_v37  ;;  %v217_v46 = vpop.f32.mrb[1].mxu0  ;;  %v287_v47 = vadd.f32 %v286_v43, %v145_v38  ;;  %v2492_v48 = vpop.f32.mrb[1].mxu1 }
 0x144   :  { %v218_v51 = vadd.f32 %v217_v46, %v141_v39 }
 0x145   :  { %290 = vst [vmem:[#allocation2] sm:$0xff] %v216_v44  ;;  %292 = vst [vmem:[#allocation2 + $0x10] sm:$0xff] %v287_v47 }
 0x146   :  { %291 = vst [vmem:[#allocation2 + $0x8] sm:$0xff] %v218_v51 }
 0x14d   :  { %v296_v13 = vld [vmem:[#allocation2] ss:$8 sm:$0x7] }
 0x14e   :  { %v529_v35 = vrot.slane %v296_v13, 2 }
 0x162   :  { %v427_v61 = vpop.f32.mrb[2].mxu0 }
 0x163   :  { %v428_v62 = vadd.f32 %v427_v61, %v3797_v56  ;;  %v429_v2 = vpop.f32.mrb[3].mxu0  ;;  %v498_v3 = vpop.f32.mrb[2].mxu1  ;;  %v542_v61 = vld [vmem:[#allocation2 + $0x1] ss:$8 sm:$0x7] }
 0x164   :  { %v430_v7 = vadd.f32 %v429_v2, %v3799_v60  ;;  %v2527_v8 = vpop.f32.mrb[3].mxu1  ;;  %v499_v29 = vadd.f32 %v498_v3, %v3807_v28 }
 0x166   :  { %v504_v9 = vcombine.low %v428_v62, %v430_v7 }
 0x168   :  { %v511_v11 = vrot.slane %v504_v9, %v3802_v4 }
 0x16a   :  { %v518_v12 = vrot.slane %v511_v11, %v3802_v4  ;;  %v759_v11 = vrot.slane %v542_v61, 2 }
 0x16c   :  { %v520_v17 = vadd.f32 %v518_v12, %v296_v13 }
 0x16e   :  { %v2279_v18 = vmul.f32 -1.442695, %v520_v17 }
 0x170   :  { %3350 = vpow2.f32 %v2279_v18 }
 0x17a   :  { %v3351_v20 = vpop.eup %3350 }
 0x17b   :  { %v524_v21 = vadd.f32 1.0, %v3351_v20 }
 0x17d   :  { %3352 = vrcp.f32 %v524_v21 }
 0x187   :  { %v3353_v30 = vpop.eup %3352 }
 0x188   :  { %v527_v34 = vmul.f32 %v3353_v30, %v499_v29  ;;  %v534_v38 = vrot.slane %v3353_v30, 1 }
 0x18a   :  { %v531_v37 = vadd.f32 %v529_v35, %v527_v34  ;;  %v536_v39 = vsub.f32 1.0, %v534_v38  ;;  %v538_v44 = vmul.f32 %v534_v38, %v3749_v26  ;;  %v1234_v38 = vld [vmem:[#allocation9 + $0x8] sm:$0xff] }
 0x18c   :  { %3354 = vtanh.f32 %v531_v37 }
 0x196   :  { %v3355_v42 = vpop.eup %3354 }
 0x197   :  { %v537_v43 = vmul.f32 %v3355_v42, %v536_v39  ;;  %v1237_v39 = vld [vmem:[#allocation9 + $0x20] sm:$0xff] }
 0x198   :  { %v3914_v42 = vpack.c.bf16 %v1237_v39, %v1234_v38 }
 0x199   :  { %v3811_v46 = vadd.f32 %v538_v44, %v537_v43  ;;  %v1233_v43 = vld [vmem:[#allocation9] sm:$0xff]  ;;  %v1236_v44 = vld [vmem:[#allocation9 + $0x18] sm:$0xff] }
 0x19b   :  { %540 = vst [vmem:[#allocation3] sm:$0x1] %v3811_v46  ;;  %656 = vmatmul.mubr.f32.vlgmr.msra.gmra.mrb[4].mxu0 %v3811_v46  ;;  %2561 = vmatmul.mubr.f32.vlgmr.msra.gmra.mrb[4].mxu1 %v3811_v46 }
 0x19c   :  { %2979 = vmatpush1.bf16.msra.mxu0 %v3666_v22  ;;  %3010 = vmatpush3.bf16.msra.mxu1 %v3672_v27 }
 0x19d   :  { %2981 = vmatprep.subr.bf16.mxu0 %v3669_v23  ;;  %3011 = vmatprep.subr.bf16.mxu1 %v3548_v0 }
 0x19e   :  { %885 = vmatprep.mubr.f32.mxu0 %v3549_v1  ;;  %2595 = vmatprep.mubr.msk.f32.mxu1 %vm3550_vm0, %v3549_v1 }
 0x1a0   :  { %2983 = vmatpush1.bf16.msra.mxu0 %v3675_v31  ;;  %3013 = vmatpush3.bf16.msra.mxu1 %v3682_v36 }
 0x1a1   :  { %2985 = vmatprep.subr.bf16.mxu0 %v3679_v32  ;;  %3014 = vmatprep.subr.bf16.mxu1 %v3548_v0 }
 0x1a4   :  { %2987 = vmatpush1.bf16.msra.mxu0 %v3688_v40  ;;  %3016 = vmatpush3.bf16.msra.mxu1 %v3694_v45 }
 0x1a5   :  { %2989 = vmatprep.subr.bf16.mxu0 %v3691_v41  ;;  %3017 = vmatprep.subr.bf16.mxu1 %v3548_v0 }
 0x1a8   :  { %2991 = vmatpush1.bf16.msra.mxu0 %v3698_v49  ;;  %3019 = vmatpush3.bf16.msra.mxu1 %v3704_v54 }
 0x1a9   :  { %2993 = vmatprep.subr.bf16.mxu0 %v3701_v50  ;;  %3020 = vmatprep.subr.bf16.mxu1 %v3548_v0 }
 0x1ac   :  { %2995 = vmatpush1.bf16.msra.mxu0 %v3708_v58  ;;  %3022 = vmatpush3.bf16.msra.mxu1 %v3714_v63 }
 0x1ad   :  { %2997 = vmatprep.subr.bf16.mxu0 %v3711_v59  ;;  %3023 = vmatprep.subr.bf16.mxu1 %v3548_v0 }
 0x1b0   :  { %2999 = vmatpush1.bf16.msra.mxu0 %v3718_v5  ;;  %3025 = vmatpush3.bf16.msra.mxu1 %v3724_v10 }
 0x1b1   :  { %3001 = vmatprep.subr.bf16.mxu0 %v3721_v6  ;;  %3026 = vmatprep.subr.bf16.mxu1 %v3548_v0 }
 0x1b4   :  { %3003 = vmatpush1.bf16.msra.mxu0 %v3728_v15  ;;  %3028 = vmatpush3.bf16.msra.mxu1 %v3734_v19 }
 0x1b5   :  { %3005 = vmatprep.subr.bf16.mxu0 %v3731_v16  ;;  %3029 = vmatprep.subr.bf16.mxu1 %v3548_v0 }
 0x1b8   :  { %3007 = vmatpush1.bf16.msra.mxu0 %v3738_v24  ;;  %3031 = vmatpush3.bf16.msra.mxu1 %v3742_v25 }
 0x1b9   :  { %3033 = vmatprep.subr.bf16.mxu0 %v3664_v14  ;;  %3064 = vmatprep.subr.bf16.mxu1 %v3548_v0 }
 0x26e   :  { %v657_v26 = vpop.f32.mrb[4].mxu0  ;;  %v728_v33 = vpop.f32.mrb[4].mxu1 }
 0x26f   :  { %v658_v47 = vadd.f32 %v657_v26, %v3797_v56  ;;  %v659_v48 = vpop.f32.mrb[5].mxu0  ;;  %v2562_v51 = vpop.f32.mrb[5].mxu1  ;;  %v729_v7 = vadd.f32 %v728_v33, %v3807_v28  ;;  %v1243_v26 = vld [vmem:[#allocation9 + $0x50] sm:$0xff] }
 0x270   :  { %v660_v52 = vadd.f32 %v659_v48, %v3799_v60  ;;  %v1246_v51 = vld [vmem:[#allocation9 + $0x68] sm:$0xff] }
 0x272   :  { %v734_v53 = vcombine.low %v658_v47, %v660_v52  ;;  %v1239_v47 = vld [vmem:[#allocation9 + $0x30] sm:$0xff]  ;;  %v1249_v52 = vld [vmem:[#allocation9 + $0x80] sm:$0xff] }
 0x274   :  { %v741_v55 = vrot.slane %v734_v53, %v3802_v4  ;;  %v3926_v53 = vpack.c.bf16 %v1249_v52, %v1246_v51 }
 0x276   :  { %v748_v57 = vrot.slane %v741_v55, %v3802_v4  ;;  %v1245_v55 = vld [vmem:[#allocation9 + $0x60] sm:$0xff] }
 0x278   :  { %v750_v62 = vadd.f32 %v748_v57, %v542_v61  ;;  %v1248_v57 = vld [vmem:[#allocation9 + $0x78] sm:$0xff]  ;;  %v1247_v61 = vld [vmem:[#allocation9 + $0x70] sm:$0xff] }
 0x27a   :  { %v2280_v2 = vmul.f32 -1.442695, %v750_v62  ;;  %v3928_v62 = vpack.c.bf16 %v1248_v57, %v1245_v55 }
 0x27c   :  { %3356 = vpow2.f32 %v2280_v2  ;;  %v1250_v2 = vld [vmem:[#allocation9 + $0x88] sm:$0xff] }
 0x286   :  { %v3357_v14 = vpop.eup %3356 }
 0x287   :  { %v754_v3 = vadd.f32 1.0, %v3357_v14  ;;  %v3931_v14 = vpack.c.bf16 %v1250_v2, %v1247_v61 }
 0x289   :  { %3358 = vrcp.f32 %v754_v3  ;;  %v1252_v3 = vld [vmem:[#allocation9 + $0x98] sm:$0xff] }
 0x293   :  { %v3359_v8 = vpop.eup %3358 }
 0x294   :  { %v757_v9 = vmul.f32 %v3359_v8, %v729_v7  ;;  %v764_v13 = vrot.slane %v3359_v8, 1  ;;  %v1255_v7 = vld [vmem:[#allocation9 + $0xb0] sm:$0xff] }
 0x295   :  { %v3935_v8 = vpack.c.bf16 %v1255_v7, %v1252_v3 }
 0x296   :  { %v761_v12 = vadd.f32 %v759_v11, %v757_v9  ;;  %v766_v17 = vsub.f32 1.0, %v764_v13  ;;  %v768_v21 = vmul.f32 %v764_v13, %v3811_v46  ;;  %v3916_v46 = vpack.c.bf16 %v1236_v44, %v1233_v43  ;;  %v1251_v9 = vld [vmem:[#allocation9 + $0x90] sm:$0xff]  ;;  %v1254_v11 = vld [vmem:[#allocation9 + $0xa8] sm:$0xff] }
 0x297   :  { %v3938_v13 = vpack.c.bf16 %v1254_v11, %v1251_v9  ;;  %v1275_v44 = vld [vmem:[#allocation9 + $0x150] sm:$0xff] }
 0x298   :  { %3360 = vtanh.f32 %v761_v12  ;;  %v1253_v12 = vld [vmem:[#allocation9 + $0xa0] sm:$0xff] }
 0x2a2   :  { %v3361_v18 = vpop.eup %3360 }
 0x2a3   :  { %v767_v20 = vmul.f32 %v3361_v18, %v766_v17  ;;  %v1256_v17 = vld [vmem:[#allocation9 + $0xb8] sm:$0xff] }
 0x2a4   :  { %v3941_v18 = vpack.c.bf16 %v1256_v17, %v1253_v12  ;;  %v1002_v12 = vld [vmem:[#allocation2 + $0x3] ss:$8 sm:$0x7] }
 0x2a5   :  { %v3857_v29 = vadd.f32 %v768_v21, %v767_v20  ;;  %v1258_v20 = vld [vmem:[#allocation9 + $0xc8] sm:$0xff]  ;;  %v1261_v21 = vld [vmem:[#allocation9 + $0xe0] sm:$0xff] }
 0x2a7   :  { %770 = vst [vmem:[#allocation3 + $0x1] sm:$0x1] %v3857_v29  ;;  %886 = vmatmul.mubr.f32.vlgmr.msra.gmra.mrb[6].mxu0 %v3857_v29  ;;  %2596 = vmatmul.mubr.f32.vlgmr.msra.gmra.mrb[6].mxu1 %v3857_v29 }
 0x2a8   :  { %3035 = vmatpush1.bf16.msra.mxu0 %v3666_v22  ;;  %3066 = vmatpush3.bf16.msra.mxu1 %v3672_v27 }
 0x2a9   :  { %3037 = vmatprep.subr.bf16.mxu0 %v3669_v23  ;;  %3067 = vmatprep.subr.bf16.mxu1 %v3548_v0 }
 0x2aa   :  { %1115 = vmatprep.mubr.f32.mxu0 %v3549_v1  ;;  %2630 = vmatprep.mubr.msk.f32.mxu1 %vm3550_vm0, %v3549_v1 }
 0x2ac   :  { %3039 = vmatpush1.bf16.msra.mxu0 %v3675_v31  ;;  %3069 = vmatpush3.bf16.msra.mxu1 %v3682_v36 }
 0x2ad   :  { %3041 = vmatprep.subr.bf16.mxu0 %v3679_v32  ;;  %3070 = vmatprep.subr.bf16.mxu1 %v3548_v0 }
 0x2b0   :  { %3043 = vmatpush1.bf16.msra.mxu0 %v3688_v40  ;;  %3072 = vmatpush3.bf16.msra.mxu1 %v3694_v45 }
 0x2b1   :  { %3045 = vmatprep.subr.bf16.mxu0 %v3691_v41  ;;  %3073 = vmatprep.subr.bf16.mxu1 %v3548_v0 }
 0x2b4   :  { %3047 = vmatpush1.bf16.msra.mxu0 %v3698_v49  ;;  %3075 = vmatpush3.bf16.msra.mxu1 %v3704_v54  ;;  %v772_v54 = vld [vmem:[#allocation2 + $0x2] ss:$8 sm:$0x7] }
 0x2b5   :  { %3049 = vmatprep.subr.bf16.mxu0 %v3701_v50  ;;  %3076 = vmatprep.subr.bf16.mxu1 %v3548_v0 }
 0x2b8   :  { %3051 = vmatpush1.bf16.msra.mxu0 %v3708_v58  ;;  %3078 = vmatpush3.bf16.msra.mxu1 %v3714_v63 }
 0x2b9   :  { %3053 = vmatprep.subr.bf16.mxu0 %v3711_v59  ;;  %3079 = vmatprep.subr.bf16.mxu1 %v3548_v0 }
 0x2bc   :  { %3055 = vmatpush1.bf16.msra.mxu0 %v3718_v5  ;;  %3081 = vmatpush3.bf16.msra.mxu1 %v3724_v10 }
 0x2bd   :  { %3057 = vmatprep.subr.bf16.mxu0 %v3721_v6  ;;  %3082 = vmatprep.subr.bf16.mxu1 %v3548_v0 }
 0x2c0   :  { %3059 = vmatpush1.bf16.msra.mxu0 %v3728_v15  ;;  %3084 = vmatpush3.bf16.msra.mxu1 %v3734_v19 }
 0x2c1   :  { %3061 = vmatprep.subr.bf16.mxu0 %v3731_v16  ;;  %3085 = vmatprep.subr.bf16.mxu1 %v3548_v0  ;;  %v989_v16 = vrot.slane %v772_v54, 2 }
 0x2c4   :  { %3063 = vmatpush1.bf16.msra.mxu0 %v3738_v24  ;;  %3087 = vmatpush3.bf16.msra.mxu1 %v3742_v25 }
 0x2c5   :  { %3120 = vmatprep.subr.bf16.mxu1 %v3548_v0  ;;  %3089 = vmatprep.subr.bf16.mxu0 %v3914_v42 }
 0x37a   :  { %v887_v22 = vpop.f32.mrb[6].mxu0  ;;  %v958_v23 = vpop.f32.mrb[6].mxu1 }
 0x37b   :  { %v888_v31 = vadd.f32 %v887_v22, %v3797_v56  ;;  %v889_v32 = vpop.f32.mrb[7].mxu0  ;;  %v2597_v40 = vpop.f32.mrb[7].mxu1  ;;  %v959_v6 = vadd.f32 %v958_v23, %v3807_v28  ;;  %v1257_v22 = vld [vmem:[#allocation9 + $0xc0] sm:$0xff]  ;;  %v1260_v23 = vld [vmem:[#allocation9 + $0xd8] sm:$0xff] }
 0x37c   :  { %v890_v41 = vadd.f32 %v889_v32, %v3799_v60  ;;  %v3948_v32 = vpack.c.bf16 %v1260_v23, %v1257_v22  ;;  %v1262_v40 = vld [vmem:[#allocation9 + $0xe8] sm:$0xff] }
 0x37e   :  { %v964_v45 = vcombine.low %v888_v31, %v890_v41  ;;  %v1259_v31 = vld [vmem:[#allocation9 + $0xd0] sm:$0xff]  ;;  %v1264_v41 = vld [vmem:[#allocation9 + $0xf8] sm:$0xff] }
 0x380   :  { %v971_v49 = vrot.slane %v964_v45, %v3802_v4  ;;  %v1267_v45 = vld [vmem:[#allocation9 + $0x110] sm:$0xff] }
 0x382   :  { %v978_v50 = vrot.slane %v971_v49, %v3802_v4  ;;  %v3951_v49 = vpack.c.bf16 %v1262_v40, %v1259_v31 }
 0x384   :  { %v980_v58 = vadd.f32 %v978_v50, %v772_v54  ;;  %v3953_v50 = vpack.c.bf16 %v1267_v45, %v1264_v41  ;;  %v1263_v54 = vld [vmem:[#allocation9 + $0xf0] sm:$0xff]  ;;  %v1219_v41 = vrot.slane %v1002_v12, 2 }
 0x386   :  { %v2281_v59 = vmul.f32 -1.442695, %v980_v58  ;;  %v1266_v58 = vld [vmem:[#allocation9 + $0x108] sm:$0xff] }
 0x388   :  { %3362 = vpow2.f32 %v2281_v59  ;;  %v1265_v59 = vld [vmem:[#allocation9 + $0x100] sm:$0xff] }
 0x392   :  { %v3363_v63 = vpop.eup %3362 }
 0x393   :  { %v984_v5 = vadd.f32 1.0, %v3363_v63  ;;  %v3956_v63 = vpack.c.bf16 %v1266_v58, %v1263_v54 }
 0x395   :  { %3364 = vrcp.f32 %v984_v5  ;;  %v1268_v5 = vld [vmem:[#allocation9 + $0x118] sm:$0xff] }
 0x39f   :  { %v3365_v10 = vpop.eup %3364 }
 0x3a0   :  { %v987_v15 = vmul.f32 %v3365_v10, %v959_v6  ;;  %v994_v24 = vrot.slane %v3365_v10, 1  ;;  %v1270_v6 = vld [vmem:[#allocation9 + $0x128] sm:$0xff]  ;;  %v1273_v10 = vld [vmem:[#allocation9 + $0x140] sm:$0xff] }
 0x3a2   :  { %v991_v19 = vadd.f32 %v989_v16, %v987_v15  ;;  %v996_v25 = vsub.f32 1.0, %v994_v24  ;;  %v998_v35 = vmul.f32 %v994_v24, %v3857_v29  ;;  %v3945_v29 = vpack.c.bf16 %v1261_v21, %v1258_v20  ;;  %v1272_v24 = vld [vmem:[#allocation9 + $0x138] sm:$0xff] }
 0x3a3   :  { %v3960_v15 = vpack.c.bf16 %v1268_v5, %v1265_v59  ;;  %v3962_v16 = vpack.c.bf16 %v1273_v10, %v1270_v6 }
 0x3a4   :  { %3366 = vtanh.f32 %v991_v19  ;;  %v1269_v19 = vld [vmem:[#allocation9 + $0x120] sm:$0xff] }
 0x3a5   :  { %v3966_v38 = vpack.c.bf16 %v1272_v24, %v1269_v19  ;;  %v1468_v19 = vld [vmem:[#allocation9 + $0x28] sm:$0xff] }
 0x3ae   :  { %v3367_v30 = vpop.eup %3366 }
 0x3af   :  { %v997_v34 = vmul.f32 %v3367_v30, %v996_v25  ;;  %v1271_v25 = vld [vmem:[#allocation9 + $0x130] sm:$0xff]  ;;  %v1274_v30 = vld [vmem:[#allocation9 + $0x148] sm:$0xff] }
 0x3b0   :  { %v3970_v39 = vpack.c.bf16 %v1274_v30, %v1271_v25  ;;  %v1471_v25 = vld [vmem:[#allocation9 + $0x40] sm:$0xff]  ;;  %v1474_v30 = vld [vmem:[#allocation9 + $0x58] sm:$0xff] }
 0x3b1   :  { %v3902_v37 = vadd.f32 %v998_v35, %v997_v34  ;;  %v1276_v34 = vld [vmem:[#allocation9 + $0x158] sm:$0xff]  ;;  %v1279_v35 = vld [vmem:[#allocation9 + $0x170] sm:$0xff] }
 0x3b2   :  { %v3972_v43 = vpack.c.bf16 %v1279_v35, %v1276_v34  ;;  %v4021_v34 = vpack.c.bf16 %v1474_v30, %v1471_v25 }
 0x3b3   :  { %1000 = vst [vmem:[#allocation3 + $0x2] sm:$0x1] %v3902_v37  ;;  %1116 = vmatmul.mubr.f32.vlgmr.msra.gmra.mrb[8].mxu0 %v3902_v37  ;;  %2631 = vmatmul.mubr.f32.vlgmr.msra.gmra.mrb[8].mxu1 %v3902_v37 }
 0x3b4   :  { %3122 = vmatpush3.bf16.msra.mxu1 %v3672_v27  ;;  %1345 = vmatprep.mubr.f32.mxu0 %v3549_v1  ;;  %v1240_v27 = vld [vmem:[#allocation9 + $0x38] sm:$0xff] }
 0x3b5   :  { %3123 = vmatprep.subr.bf16.mxu1 %v3548_v0  ;;  %2665 = vmatprep.mubr.msk.f32.mxu1 %vm3550_vm0, %v3549_v1  ;;  %v3920_v33 = vpack.c.bf16 %v1243_v26, %v1240_v27  ;;  %v1278_v27 = vld [vmem:[#allocation9 + $0x168] sm:$0xff]  ;;  %v1277_v26 = vld [vmem:[#allocation9 + $0x160] sm:$0xff] }
 0x3b6   :  { %3091 = vmatpush1.bf16.msra.mxu0 %v3916_v46 }
 0x3b7   :  { %3093 = vmatprep.subr.bf16.mxu0 %v3920_v33 }
 0x3b8   :  { %3125 = vmatpush3.bf16.msra.mxu1 %v3682_v36  ;;  %v1242_v36 = vld [vmem:[#allocation9 + $0x48] sm:$0xff] }
 0x3b9   :  { %3126 = vmatprep.subr.bf16.mxu1 %v3548_v0  ;;  %v3922_v48 = vpack.c.bf16 %v1242_v36, %v1239_v47  ;;  %v1280_v47 = vld [vmem:[#allocation9 + $0x178] sm:$0xff]  ;;  %v3976_v36 = vpack.c.bf16 %v1278_v27, %v1275_v44 }
 0x3ba   :  { %v3980_v51 = vpack.c.bf16 %v1280_v47, %v1277_v26 }
 0x3bb   :  { %3095 = vmatpush1.bf16.msra.mxu0 %v3922_v48 }
 0x3bc   :  { %3097 = vmatprep.subr.bf16.mxu0 %v3926_v53  ;;  %3128 = vmatpush3.bf16.msra.mxu1 %v3931_v14 }
 0x3bd   :  { %3129 = vmatprep.subr.bf16.mxu1 %v3548_v0 }
 0x3bf   :  { %3099 = vmatpush1.bf16.msra.mxu0 %v3928_v62 }
 0x3c0   :  { %3101 = vmatprep.subr.bf16.mxu0 %v3935_v8  ;;  %3131 = vmatpush3.bf16.msra.mxu1 %v3941_v18 }
 0x3c1   :  { %3132 = vmatprep.subr.bf16.mxu1 %v3548_v0 }
 0x3c3   :  { %3103 = vmatpush1.bf16.msra.mxu0 %v3938_v13 }
 0x3c4   :  { %3105 = vmatprep.subr.bf16.mxu0 %v3945_v29  ;;  %3134 = vmatpush3.bf16.msra.mxu1 %v3951_v49 }
 0x3c5   :  { %3135 = vmatprep.subr.bf16.mxu1 %v3548_v0 }
 0x3c7   :  { %3107 = vmatpush1.bf16.msra.mxu0 %v3948_v32 }
 0x3c8   :  { %3109 = vmatprep.subr.bf16.mxu0 %v3953_v50  ;;  %3137 = vmatpush3.bf16.msra.mxu1 %v3960_v15 }
 0x3c9   :  { %3138 = vmatprep.subr.bf16.mxu1 %v3548_v0 }
 0x3cb   :  { %3111 = vmatpush1.bf16.msra.mxu0 %v3956_v63 }
 0x3cc   :  { %3113 = vmatprep.subr.bf16.mxu0 %v3962_v16  ;;  %3140 = vmatpush3.bf16.msra.mxu1 %v3970_v39 }
 0x3cd   :  { %3141 = vmatprep.subr.bf16.mxu1 %v3548_v0 }
 0x3cf   :  { %3115 = vmatpush1.bf16.msra.mxu0 %v3966_v38 }
 0x3d0   :  { %3117 = vmatprep.subr.bf16.mxu0 %v3972_v43  ;;  %3143 = vmatpush3.bf16.msra.mxu1 %v3980_v51 }
 0x3d1   :  { %3176 = vmatprep.subr.bf16.mxu1 %v3548_v0 }
 0x3d3   :  { %3119 = vmatpush1.bf16.msra.mxu0 %v3976_v36 }
 0x3d4   :  { %3145 = vmatprep.subr.bf16.mxu0 %v3914_v42 }
 0x486   :  { %v1117_v52 = vpop.f32.mrb[8].mxu0  ;;  %v1188_v55 = vpop.f32.mrb[8].mxu1 }
 0x487   :  { %v1118_v57 = vadd.f32 %v1117_v52, %v3797_v56  ;;  %v1119_v61 = vpop.f32.mrb[9].mxu0  ;;  %v2632_v2 = vpop.f32.mrb[9].mxu1  ;;  %v1189_v23 = vadd.f32 %v1188_v55, %v3807_v28 }
 0x488   :  { %v1120_v3 = vadd.f32 %v1119_v61, %v3799_v60  ;;  %v1232_v2 = vld [vmem:[#allocation2 + $0x4] ss:$8 sm:$0x7] }
 0x48a   :  { %v1194_v7 = vcombine.low %v1118_v57, %v1120_v3 }
 0x48c   :  { %v1201_v9 = vrot.slane %v1194_v7, %v3802_v4 }
 0x48e   :  { %v1208_v11 = vrot.slane %v1201_v9, %v3802_v4 }
 0x490   :  { %v1210_v17 = vadd.f32 %v1208_v11, %v1002_v12 }
 0x492   :  { %v2282_v20 = vmul.f32 -1.442695, %v1210_v17 }
 0x494   :  { %3368 = vpow2.f32 %v2282_v20 }
 0x49e   :  { %v3369_v21 = vpop.eup %3368 }
 0x49f   :  { %v1214_v22 = vadd.f32 1.0, %v3369_v21  ;;  %v1449_v21 = vrot.slane %v1232_v2, 2 }
 0x4a1   :  { %3370 = vrcp.f32 %v1214_v22 }
 0x4ab   :  { %v3371_v31 = vpop.eup %3370 }
 0x4ac   :  { %v1217_v40 = vmul.f32 %v3371_v31, %v1189_v23  ;;  %v1224_v54 = vrot.slane %v3371_v31, 1 }
 0x4ae   :  { %v1221_v45 = vadd.f32 %v1219_v41, %v1217_v40  ;;  %v1226_v58 = vsub.f32 1.0, %v1224_v54  ;;  %v1228_v6 = vmul.f32 %v1224_v54, %v3902_v37  ;;  %v1465_v37 = vld [vmem:[#allocation9 + $0x10] sm:$0xff] }
 0x4af   :  { %v4017_v24 = vpack.c.bf16 %v1468_v19, %v1465_v37 }
 0x4b0   :  { %3372 = vtanh.f32 %v1221_v45 }
 0x4ba   :  { %v3373_v59 = vpop.eup %3372 }
 0x4bb   :  { %v1227_v5 = vmul.f32 %v3373_v59, %v1226_v58 }
 0x4bd   :  { %v3993_v10 = vadd.f32 %v1228_v6, %v1227_v5 }
 0x4bf   :  { %1230 = vst [vmem:[#allocation3 + $0x3] sm:$0x1] %v3993_v10  ;;  %1346 = vmatmul.mubr.f32.vlgmr.msra.gmra.mrb[10].mxu0 %v3993_v10  ;;  %2666 = vmatmul.mubr.f32.vlgmr.msra.gmra.mrb[10].mxu1 %v3993_v10 }
 0x4c0   :  { %3147 = vmatpush1.bf16.msra.mxu0 %v3916_v46  ;;  %1575 = vmatprep.mubr.f32.mxu0 %v3549_v1 }
 0x4c1   :  { %3149 = vmatprep.subr.bf16.mxu0 %v3920_v33  ;;  %2700 = vmatprep.mubr.msk.f32.mxu1 %vm3550_vm0, %v3549_v1 }
 0x4c2   :  { %3178 = vmatpush3.bf16.msra.mxu1 %v4017_v24 }
 0x4c3   :  { %3179 = vmatprep.subr.bf16.mxu1 %v3548_v0 }
 0x4c4   :  { %3151 = vmatpush1.bf16.msra.mxu0 %v3922_v48 }
 0x4c5   :  { %3153 = vmatprep.subr.bf16.mxu0 %v3926_v53 }
 0x4c6   :  { %3181 = vmatpush3.bf16.msra.mxu1 %v4021_v34 }
 0x4c7   :  { %3182 = vmatprep.subr.bf16.mxu1 %v3548_v0 }
 0x4c8   :  { %3155 = vmatpush1.bf16.msra.mxu0 %v3928_v62 }
 0x4c9   :  { %3157 = vmatprep.subr.bf16.mxu0 %v3935_v8 }
 0x4ca   :  { %3184 = vmatpush3.bf16.msra.mxu1 %v3931_v14 }
 0x4cb   :  { %3185 = vmatprep.subr.bf16.mxu1 %v3548_v0 }
 0x4cc   :  { %3159 = vmatpush1.bf16.msra.mxu0 %v3938_v13 }
 0x4cd   :  { %3161 = vmatprep.subr.bf16.mxu0 %v3945_v29 }
 0x4ce   :  { %3187 = vmatpush3.bf16.msra.mxu1 %v3941_v18 }
 0x4cf   :  { %3188 = vmatprep.subr.bf16.mxu1 %v3548_v0 }
 0x4d0   :  { %3163 = vmatpush1.bf16.msra.mxu0 %v3948_v32 }
 0x4d1   :  { %3165 = vmatprep.subr.bf16.mxu0 %v3953_v50 }
 0x4d2   :  { %3190 = vmatpush3.bf16.msra.mxu1 %v3951_v49 }
 0x4d3   :  { %3191 = vmatprep.subr.bf16.mxu1 %v3548_v0 }
 0x4d4   :  { %3167 = vmatpush1.bf16.msra.mxu0 %v3956_v63 }
 0x4d5   :  { %3169 = vmatprep.subr.bf16.mxu0 %v3962_v16 }
 0x4d6   :  { %3193 = vmatpush3.bf16.msra.mxu1 %v3960_v15 }
 0x4d7   :  { %3194 = vmatprep.subr.bf16.mxu1 %v3548_v0 }
 0x4d8   :  { %3171 = vmatpush1.bf16.msra.mxu0 %v3966_v38 }
 0x4d9   :  { %3173 = vmatprep.subr.bf16.mxu0 %v3972_v43 }
 0x4da   :  { %3196 = vmatpush3.bf16.msra.mxu1 %v3970_v39 }
 0x4db   :  { %3197 = vmatprep.subr.bf16.mxu1 %v3548_v0 }
 0x4dc   :  { %3175 = vmatpush1.bf16.msra.mxu0 %v3976_v36 }
 0x4dd   :  { %3201 = vmatprep.subr.bf16.mxu0 %v3914_v42 }
 0x4de   :  { %3199 = vmatpush3.bf16.msra.mxu1 %v3980_v51 }
 0x4df   :  { %3232 = vmatprep.subr.bf16.mxu1 %v3548_v0 }
 0x592   :  { %v1347_v35 = vpop.f32.mrb[10].mxu0  ;;  %v1418_v44 = vpop.f32.mrb[10].mxu1 }
 0x593   :  { %v1348_v27 = vadd.f32 %v1347_v35, %v3797_v56  ;;  %v1349_v26 = vpop.f32.mrb[11].mxu0  ;;  %v2667_v47 = vpop.f32.mrb[11].mxu1  ;;  %v1419_v12 = vadd.f32 %v1418_v44, %v3807_v28  ;;  %v1462_v35 = vld [vmem:[#allocation2 + $0x5] ss:$8 sm:$0x7] }
 0x594   :  { %v1350_v52 = vadd.f32 %v1349_v26, %v3799_v60 }
 0x596   :  { %v1424_v55 = vcombine.low %v1348_v27, %v1350_v52 }
 0x598   :  { %v1431_v57 = vrot.slane %v1424_v55, %v3802_v4 }
 0x59a   :  { %v1438_v61 = vrot.slane %v1431_v57, %v3802_v4  ;;  %v1679_v57 = vrot.slane %v1462_v35, 2 }
 0x59c   :  { %v1440_v3 = vadd.f32 %v1438_v61, %v1232_v2 }
 0x59e   :  { %v2283_v7 = vmul.f32 -1.442695, %v1440_v3 }
 0x5a0   :  { %3374 = vpow2.f32 %v2283_v7 }
 0x5aa   :  { %v3375_v9 = vpop.eup %3374 }
 0x5ab   :  { %v1444_v11 = vadd.f32 1.0, %v3375_v9 }
 0x5ad   :  { %3376 = vrcp.f32 %v1444_v11 }
 0x5b7   :  { %v3377_v17 = vpop.eup %3376 }
 0x5b8   :  { %v1447_v20 = vmul.f32 %v3377_v17, %v1419_v12  ;;  %v1454_v23 = vrot.slane %v3377_v17, 1 }
 0x5ba   :  { %v1451_v22 = vadd.f32 %v1449_v21, %v1447_v20  ;;  %v1456_v31 = vsub.f32 1.0, %v1454_v23  ;;  %v1458_v45 = vmul.f32 %v1454_v23, %v3993_v10  ;;  %v2153_v21 = vld [vmem:[#allocation10] sm:$0xff] }
 0x5bc   :  { %3378 = vtanh.f32 %v1451_v22  ;;  %v2154_v22 = vld [vmem:[#allocation10 + $0x8] sm:$0xff] }
 0x5bd   :  { %v3313_v23 = vpack.c.bf16 %v2154_v22, %v2153_v21 }
 0x5c6   :  { %v3379_v40 = vpop.eup %3378 }
 0x5c7   :  { %v1457_v41 = vmul.f32 %v3379_v40, %v1456_v31  ;;  %v2155_v31 = vld [vmem:[#allocation10 + $0x10] sm:$0xff]  ;;  %v2156_v40 = vld [vmem:[#allocation10 + $0x18] sm:$0xff] }
 0x5c9   :  { %v4043_v54 = vadd.f32 %v1458_v45, %v1457_v41  ;;  %v3316_v41 = vpack.c.bf16 %v2156_v40, %v2155_v31  ;;  %v2157_v45 = vld [vmem:[#allocation10 + $0x20] sm:$0xff] }
 0x5cb   :  { %1460 = vst [vmem:[#allocation3 + $0x4] sm:$0x1] %v4043_v54  ;;  %1576 = vmatmul.mubr.f32.vlgmr.msra.gmra.mrb[12].mxu0 %v4043_v54  ;;  %2701 = vmatmul.mubr.f32.vlgmr.msra.gmra.mrb[12].mxu1 %v4043_v54 }
 0x5cc   :  { %3203 = vmatpush1.bf16.msra.mxu0 %v3916_v46  ;;  %3234 = vmatpush3.bf16.msra.mxu1 %v4017_v24 }
 0x5cd   :  { %3205 = vmatprep.subr.bf16.mxu0 %v3920_v33  ;;  %3235 = vmatprep.subr.bf16.mxu1 %v3548_v0 }
 0x5ce   :  { %1805 = vmatprep.mubr.f32.mxu0 %v3549_v1  ;;  %2735 = vmatprep.mubr.msk.f32.mxu1 %vm3550_vm0, %v3549_v1 }
 0x5d0   :  { %3207 = vmatpush1.bf16.msra.mxu0 %v3922_v48  ;;  %3237 = vmatpush3.bf16.msra.mxu1 %v4021_v34 }
 0x5d1   :  { %3209 = vmatprep.subr.bf16.mxu0 %v3926_v53  ;;  %3238 = vmatprep.subr.bf16.mxu1 %v3548_v0 }
 0x5d4   :  { %3211 = vmatpush1.bf16.msra.mxu0 %v3928_v62  ;;  %3240 = vmatpush3.bf16.msra.mxu1 %v3931_v14 }
 0x5d5   :  { %3213 = vmatprep.subr.bf16.mxu0 %v3935_v8  ;;  %3241 = vmatprep.subr.bf16.mxu1 %v3548_v0 }
 0x5d8   :  { %3215 = vmatpush1.bf16.msra.mxu0 %v3938_v13  ;;  %3243 = vmatpush3.bf16.msra.mxu1 %v3941_v18 }
 0x5d9   :  { %3217 = vmatprep.subr.bf16.mxu0 %v3945_v29  ;;  %3244 = vmatprep.subr.bf16.mxu1 %v3548_v0 }
 0x5dc   :  { %3219 = vmatpush1.bf16.msra.mxu0 %v3948_v32  ;;  %3246 = vmatpush3.bf16.msra.mxu1 %v3951_v49 }
 0x5dd   :  { %3221 = vmatprep.subr.bf16.mxu0 %v3953_v50  ;;  %3247 = vmatprep.subr.bf16.mxu1 %v3548_v0 }
 0x5e0   :  { %3223 = vmatpush1.bf16.msra.mxu0 %v3956_v63  ;;  %3249 = vmatpush3.bf16.msra.mxu1 %v3960_v15 }
 0x5e1   :  { %3225 = vmatprep.subr.bf16.mxu0 %v3962_v16  ;;  %3250 = vmatprep.subr.bf16.mxu1 %v3548_v0 }
 0x5e4   :  { %3227 = vmatpush1.bf16.msra.mxu0 %v3966_v38  ;;  %3252 = vmatpush3.bf16.msra.mxu1 %v3970_v39 }
 0x5e5   :  { %3229 = vmatprep.subr.bf16.mxu0 %v3972_v43  ;;  %3253 = vmatprep.subr.bf16.mxu1 %v3548_v0 }
 0x5e8   :  { %3231 = vmatpush1.bf16.msra.mxu0 %v3976_v36  ;;  %3255 = vmatpush3.bf16.msra.mxu1 %v3980_v51 }
 0x5e9   :  { %3257 = vmatprep.subr.bf16.mxu0 %v3914_v42  ;;  %3288 = vmatprep.subr.bf16.mxu1 %v3548_v0 }
 0x69e   :  { %v1577_v58 = vpop.f32.mrb[12].mxu0  ;;  %v1648_v59 = vpop.f32.mrb[12].mxu1 }
 0x69f   :  { %v1578_v5 = vadd.f32 %v1577_v58, %v3797_v56  ;;  %v1579_v6 = vpop.f32.mrb[13].mxu0  ;;  %v2702_v10 = vpop.f32.mrb[13].mxu1  ;;  %v1649_v47 = vadd.f32 %v1648_v59, %v3807_v28  ;;  %v2159_v59 = vld [vmem:[#allocation10 + $0x30] sm:$0xff] }
 0x6a0   :  { %v1580_v37 = vadd.f32 %v1579_v6, %v3799_v60  ;;  %v2161_v6 = vld [vmem:[#allocation10 + $0x40] sm:$0xff]  ;;  %v2162_v10 = vld [vmem:[#allocation10 + $0x48] sm:$0xff] }
 0x6a2   :  { %v1654_v19 = vcombine.low %v1578_v5, %v1580_v37  ;;  %v3325_v37 = vpack.c.bf16 %v2162_v10, %v2161_v6 }
 0x6a4   :  { %v1661_v25 = vrot.slane %v1654_v19, %v3802_v4  ;;  %v2163_v19 = vld [vmem:[#allocation10 + $0x50] sm:$0xff] }
 0x6a6   :  { %v1668_v30 = vrot.slane %v1661_v25, %v3802_v4  ;;  %v2164_v25 = vld [vmem:[#allocation10 + $0x58] sm:$0xff] }
 0x6a8   :  { %v1670_v44 = vadd.f32 %v1668_v30, %v1462_v35  ;;  %v2165_v30 = vld [vmem:[#allocation10 + $0x60] sm:$0xff]  ;;  %v3328_v35 = vpack.c.bf16 %v2164_v25, %v2163_v19 }
 0x6aa   :  { %v2284_v27 = vmul.f32 -1.442695, %v1670_v44  ;;  %v2166_v44 = vld [vmem:[#allocation10 + $0x68] sm:$0xff] }
 0x6ac   :  { %3380 = vpow2.f32 %v2284_v27  ;;  %v3331_v27 = vpack.c.bf16 %v2166_v44, %v2165_v30 }
 0x6b6   :  { %v3381_v42 = vpop.eup %3380 }
 0x6b7   :  { %v1674_v26 = vadd.f32 1.0, %v3381_v42  ;;  %v2167_v42 = vld [vmem:[#allocation10 + $0x70] sm:$0xff] }
 0x6b9   :  { %3382 = vrcp.f32 %v1674_v26  ;;  %v2168_v26 = vld [vmem:[#allocation10 + $0x78] sm:$0xff] }
 0x6c3   :  { %v3383_v52 = vpop.eup %3382 }
 0x6c4   :  { %v1677_v55 = vmul.f32 %v3383_v52, %v1649_v47  ;;  %v1684_v2 = vrot.slane %v3383_v52, 1  ;;  %v3334_v47 = vpack.c.bf16 %v2168_v26, %v2167_v42 }
 0x6c6   :  { %v1681_v61 = vadd.f32 %v1679_v57, %v1677_v55  ;;  %v1686_v3 = vsub.f32 1.0, %v1684_v2  ;;  %v1688_v11 = vmul.f32 %v1684_v2, %v4043_v54  ;;  %v2158_v54 = vld [vmem:[#allocation10 + $0x28] sm:$0xff] }
 0x6c7   :  { %v3319_v58 = vpack.c.bf16 %v2158_v54, %v2157_v45 }
 0x6c8   :  { %3384 = vtanh.f32 %v1681_v61 }
 0x6d2   :  { %v3385_v7 = vpop.eup %3384 }
 0x6d3   :  { %v1687_v9 = vmul.f32 %v3385_v7, %v1686_v3 }
 0x6d5   :  { %v4089_v12 = vadd.f32 %v1688_v11, %v1687_v9 }
 0x6d7   :  { %1690 = vst [vmem:[#allocation3 + $0x5] sm:$0x1] %v4089_v12  ;;  %1806 = vmatmul.mubr.f32.vlgmr.msra.gmra.mrb[14].mxu0 %v4089_v12  ;;  %2736 = vmatmul.mubr.f32.vlgmr.msra.gmra.mrb[14].mxu1 %v4089_v12 }
 0x6d8   :  { %3259 = vmatpush1.bf16.msra.mxu0 %v3916_v46  ;;  %3290 = vmatpush3.bf16.msra.mxu1 %v4017_v24 }
 0x6d9   :  { %3261 = vmatprep.subr.bf16.mxu0 %v3920_v33  ;;  %3291 = vmatprep.subr.bf16.mxu1 %v3548_v0 }
 0x6da   :  { %2035 = vmatprep.mubr.f32.mxu0 %v3549_v1  ;;  %2770 = vmatprep.mubr.msk.f32.mxu1 %vm3550_vm0, %v3549_v1 }
 0x6dc   :  { %3263 = vmatpush1.bf16.msra.mxu0 %v3922_v48  ;;  %3293 = vmatpush3.bf16.msra.mxu1 %v4021_v34 }
 0x6dd   :  { %3265 = vmatprep.subr.bf16.mxu0 %v3926_v53  ;;  %3294 = vmatprep.subr.bf16.mxu1 %v3548_v0 }
 0x6e0   :  { %3267 = vmatpush1.bf16.msra.mxu0 %v3928_v62  ;;  %3296 = vmatpush3.bf16.msra.mxu1 %v3931_v14 }
 0x6e1   :  { %3269 = vmatprep.subr.bf16.mxu0 %v3935_v8  ;;  %3297 = vmatprep.subr.bf16.mxu1 %v3548_v0 }
 0x6e4   :  { %3271 = vmatpush1.bf16.msra.mxu0 %v3938_v13  ;;  %3299 = vmatpush3.bf16.msra.mxu1 %v3941_v18 }
 0x6e5   :  { %3273 = vmatprep.subr.bf16.mxu0 %v3945_v29  ;;  %3300 = vmatprep.subr.bf16.mxu1 %v3548_v0  ;;  %v1692_v29 = vld [vmem:[#allocation2 + $0x6] ss:$8 sm:$0x7] }
 0x6e8   :  { %3275 = vmatpush1.bf16.msra.mxu0 %v3948_v32  ;;  %3302 = vmatpush3.bf16.msra.mxu1 %v3951_v49 }
 0x6e9   :  { %3277 = vmatprep.subr.bf16.mxu0 %v3953_v50  ;;  %3303 = vmatprep.subr.bf16.mxu1 %v3548_v0 }
 0x6ec   :  { %3279 = vmatpush1.bf16.msra.mxu0 %v3956_v63  ;;  %3305 = vmatpush3.bf16.msra.mxu1 %v3960_v15 }
 0x6ed   :  { %3281 = vmatprep.subr.bf16.mxu0 %v3962_v16  ;;  %3306 = vmatprep.subr.bf16.mxu1 %v3548_v0 }
 0x6f0   :  { %3283 = vmatpush1.bf16.msra.mxu0 %v3966_v38  ;;  %3308 = vmatpush3.bf16.msra.mxu1 %v3970_v39  ;;  %v1909_v39 = vrot.slane %v1692_v29, 2 }
 0x6f1   :  { %3285 = vmatprep.subr.bf16.mxu0 %v3972_v43  ;;  %3309 = vmatprep.subr.bf16.mxu1 %v3548_v0 }
 0x6f4   :  { %3287 = vmatpush1.bf16.msra.mxu0 %v3976_v36  ;;  %3311 = vmatpush3.bf16.msra.mxu1 %v3980_v51 }
 0x6f5   :  { %3312 = vmatprep.subr.bf16.mxu0 %v3548_v0 }
 0x7aa   :  { %v1807_v46 = vpop.f32.mrb[14].mxu0  ;;  %v1878_v33 = vpop.f32.mrb[14].mxu1 }
 0x7ab   :  { %v1808_v48 = vadd.f32 %v1807_v46, %v3797_v56  ;;  %v1809_v53 = vpop.f32.mrb[15].mxu0  ;;  %v2737_v62 = vpop.f32.mrb[15].mxu1  ;;  %v1879_v15 = vadd.f32 %v1878_v33, %v3807_v28 }
 0x7ac   :  { %v1810_v14 = vadd.f32 %v1809_v53, %v3799_v60 }
 0x7ae   :  { %v1884_v8 = vcombine.low %v1808_v48, %v1810_v14 }
 0x7b0   :  { %v1891_v13 = vrot.slane %v1884_v8, %v3802_v4 }
 0x7b2   :  { %v1898_v18 = vrot.slane %v1891_v13, %v3802_v4 }
 0x7b4   :  { %v1900_v32 = vadd.f32 %v1898_v18, %v1692_v29 }
 0x7b6   :  { %v2285_v49 = vmul.f32 -1.442695, %v1900_v32 }
 0x7b8   :  { %3386 = vpow2.f32 %v2285_v49 }
 0x7c2   :  { %v3387_v50 = vpop.eup %3386 }
 0x7c3   :  { %v1904_v63 = vadd.f32 1.0, %v3387_v50 }
 0x7c5   :  { %3388 = vrcp.f32 %v1904_v63 }
 0x7cf   :  { %v3389_v16 = vpop.eup %3388 }
 0x7d0   :  { %v1907_v38 = vmul.f32 %v3389_v16, %v1879_v15  ;;  %v1914_v36 = vrot.slane %v3389_v16, 1 }
 0x7d2   :  { %v1911_v43 = vadd.f32 %v1909_v39, %v1907_v38  ;;  %v1916_v51 = vsub.f32 1.0, %v1914_v36  ;;  %v1918_v17 = vmul.f32 %v1914_v36, %v4089_v12  ;;  %v1922_v12 = vld [vmem:[#allocation2 + $0x7] ss:$8 sm:$0x7] }
 0x7d3   :  { %v2139_v14 = vrot.slane %v1922_v12, 2 }
 0x7d4   :  { %3390 = vtanh.f32 %v1911_v43 }
 0x7de   :  { %v3391_v24 = vpop.eup %3390 }
 0x7df   :  { %v1917_v34 = vmul.f32 %v3391_v24, %v1916_v51 }
 0x7e1   :  { %v4134_v20 = vadd.f32 %v1918_v17, %v1917_v34 }
 0x7e3   :  { %1920 = vst [vmem:[#allocation3 + $0x6] sm:$0x1] %v4134_v20  ;;  %2036 = vmatmul.mubr.f32.vlgmr.msra.gmra.mrb[16].mxu0 %v4134_v20  ;;  %2771 = vmatmul.mubr.f32.vlgmr.msra.gmra.mrb[16].mxu1 %v4134_v20 }
 0x7e4   :  { %2805 = vmatprep.mubr.msk.f32.mxu0 %vm3550_vm0, %v3549_v1  ;;  %3314 = vmatpush3.bf16.msra.mxu0 %v3313_v23  ;;  %v2160_v1 = vld [vmem:[#allocation10 + $0x38] sm:$0xff] }
 0x7e5   :  { %3315 = vmatprep.subr.bf16.mxu0 %v3548_v0  ;;  %v3322_v5 = vpack.c.bf16 %v2160_v1, %v2159_v59 }
 0x7e8   :  { %3317 = vmatpush3.bf16.msra.mxu0 %v3316_v41 }
 0x7e9   :  { %3318 = vmatprep.subr.bf16.mxu0 %v3548_v0 }
 0x7ec   :  { %3320 = vmatpush3.bf16.msra.mxu0 %v3319_v58 }
 0x7ed   :  { %3321 = vmatprep.subr.bf16.mxu0 %v3548_v0 }
 0x7f0   :  { %3323 = vmatpush3.bf16.msra.mxu0 %v3322_v5 }
 0x7f1   :  { %3324 = vmatprep.subr.bf16.mxu0 %v3548_v0 }
 0x7f4   :  { %3326 = vmatpush3.bf16.msra.mxu0 %v3325_v37 }
 0x7f5   :  { %3327 = vmatprep.subr.bf16.mxu0 %v3548_v0 }
 0x7f8   :  { %3329 = vmatpush3.bf16.msra.mxu0 %v3328_v35 }
 0x7f9   :  { %3330 = vmatprep.subr.bf16.mxu0 %v3548_v0 }
 0x7fc   :  { %3332 = vmatpush3.bf16.msra.mxu0 %v3331_v27 }
 0x7fd   :  { %3333 = vmatprep.subr.bf16.mxu0 %v3548_v0 }
 0x800   :  { %3335 = vmatpush3.bf16.msra.mxu0 %v3334_v47 }
 0x8b6   :  { %v2037_v52 = vpop.f32.mrb[16].mxu0  ;;  %v2108_v55 = vpop.f32.mrb[16].mxu1 }
 0x8b7   :  { %v2038_v57 = vadd.f32 %v2037_v52, %v3797_v56  ;;  %v2039_v61 = vpop.f32.mrb[17].mxu0  ;;  %v2772_v2 = vpop.f32.mrb[17].mxu1  ;;  %v2109_v53 = vadd.f32 %v2108_v55, %v3807_v28 }
 0x8b8   :  { %v2040_v3 = vadd.f32 %v2039_v61, %v3799_v60 }
 0x8ba   :  { %v2114_v7 = vcombine.low %v2038_v57, %v2040_v3 }
 0x8bc   :  { %v2121_v9 = vrot.slane %v2114_v7, %v3802_v4 }
 0x8be   :  { %v2128_v11 = vrot.slane %v2121_v9, %v3802_v4 }
 0x8c0   :  { %v2130_v46 = vadd.f32 %v2128_v11, %v1922_v12 }
 0x8c2   :  { %v2286_v33 = vmul.f32 -1.442695, %v2130_v46 }
 0x8c4   :  { %3392 = vpow2.f32 %v2286_v33 }
 0x8ce   :  { %v3393_v48 = vpop.eup %3392 }
 0x8cf   :  { %v2134_v0 = vadd.f32 1.0, %v3393_v48 }
 0x8d1   :  { %3394 = vrcp.f32 %v2134_v0 }
 0x8db   :  { %v3395_v62 = vpop.eup %3394 }
 0x8dc   :  { %v2137_v56 = vmul.f32 %v3395_v62, %v2109_v53  ;;  %v2144_v60 = vrot.slane %v3395_v62, 1 }
 0x8de   :  { %v2141_v8 = vadd.f32 %v2139_v14, %v2137_v56  ;;  %v2146_v13 = vsub.f32 1.0, %v2144_v60  ;;  %v2148_v4 = vmul.f32 %v2144_v60, %v4134_v20 }
 0x8e0   :  { %3396 = vtanh.f32 %v2141_v8 }
 0x8ea   :  { %v3397_v18 = vpop.eup %3396 }
 0x8eb   :  { %v2147_v29 = vmul.f32 %v3397_v18, %v2146_v13 }
 0x8ed   :  { %v2149_v32 = vadd.f32 %v2148_v4, %v2147_v29 }
 0x8ef   :  { %2150 = vst [vmem:[#allocation3 + $0x7] sm:$0x1] %v2149_v32  ;;  %2151 = vst [vmem:[#allocation13] sm:$0x1] %v2149_v32 }
 0x8f6   :  { %v2152_v49 = vld [vmem:[#allocation3] sm:$0xff] }
 0x8f7   :  { %2806 = vmatmul.mubr.f32.vlgmr.msra.gmra.mrb[18].mxu0 %v2152_v49 }
 0x8f8   :  { %3497 = shalt.err (!%p3494_p8)
}
 0x8f9   :  { %s3498_s0 = scalar_lea.hbm %s4189_s8, 16 }
 0x8fa   :  { %p3499_p9 = scmp.ne.s32.totalorder %s4189_s8, %s3498_s0  ;;  %p3502_p10 = scmp.lt.u32.totalorder %s3498_s0, %s4189_s8 }
 0x8fc   :  { %p3504_p11 = pnand %p3502_p10, %p3499_p9 }
 0x8fe   :  { %3507 = shalt.err (!%p3504_p11)
}
 0x8ff   :  { %2266 = dma.vmem_to_hbm [thread:$0]  %s2264_s13, 16, %s4189_s8, [#allocation14]   ;;  %v2287_v28 = vld [vmem:[%s4187_s6] ss:$0 sm:$0xff] }
 0x900   :  { %s3553_s30 = smov [#allocation12]  }
 0x901   :  { %s2253_s2 = sshll.u32 %s3553_s30, 4  ;;  %s2254_s2 = int_to_ptr.vmem [resolvable:$true] %s2253_s2 }
 0x902   :  { %s3508_s28 = scalar_lea.vmem %s2254_s2, 128  ;;  %p3513_p13 = scmp.lt.s32.totalorder %s2254_s2, %s2254_s2 }
 0x903   :  { %p3509_p12 = scmp.ne.s32.totalorder %s2254_s2, %s3508_s28  ;;  %p3514_p0 = scmp.lt.s32.totalorder %s3508_s28, %s3508_s28 }
 0x905   :  { %p3515_p1 = por %p3514_p0, %p3513_p13 }
 0x907   :  { %p3516_p2 = pnand %p3515_p1, %p3509_p12 }
 0x9ca   :  { %v2242_v50 = vpop.f32.mrb[18].mxu0 }
 0x9cb   :  { %v2243_v63 = vadd.f32 %v2287_v28, %v2242_v50  ;;  %v2807_v15 = vpop.f32.mrb[19].mxu0 }
 0x9cd   :  { %2246 = vst [vmem:[#allocation12] sm:$0xff] %v2243_v63 }
 0x9ce   :  { %3519 = shalt.err (!%p3516_p2)
}
 0x9cf   :  { %s3520_s15 = scalar_lea.hbm %s4188_s7, 128 }
 0x9d0   :  { %p3521_p3 = scmp.ne.s32.totalorder %s4188_s7, %s3520_s15  ;;  %p3524_p4 = scmp.lt.u32.totalorder %s3520_s15, %s4188_s7 }
 0x9d2   :  { %p3526_p5 = pnand %p3524_p4, %p3521_p3 }
 0x9d4   :  { %3529 = shalt.err (!%p3526_p5)
}
 0x9d5   :  { %2256 = dma.vmem_to_hbm [thread:$0]  %s2254_s2, 128, %s4188_s7, [#allocation6]  }
 0x9d6   :  { %3536 = dma.done.wait [#allocation6], 128  }
 0x9d7   :  { %3537 = vsyncadd [#allocation6], 4294967168 }
 0x9d8   :  { %3538 = dma.done.wait [#allocation14], 16  }
 0x9d9   :  { %3539 = vsyncadd [#allocation14], 4294967280 }
 0x9da   :  { %2273 = vsyncpa [#allocation5], 1 }
 0x9db   :  { %2274 = vsyncpa [#allocation8], 1 }
 0x9dc   :  { %2275 = vsyncpa [#allocation11], 1 }
 0x9dd   :  { %2276 = vsyncpa [#allocation6], 1 }
 0x9de   :  { %2277 = vsyncpa [#allocation14], 1 }

</bundles_post_ra>
